<compile_context>
chip_gen: v7x
topology: tpu7x:2x2x1
jax: 0.10.0
libtpu: 0.0.40
codegen_flags: <defaults>
</compile_context>

<pallas_src>
import math

import jax
import jax.numpy as jnp
from jax.experimental import pallas as pl
from jax.experimental.pallas import tpu as pltpu


# ---------------------------------------------------------------------------
# Pass 1: LayerNorm + fused QKV projection (Q columns pre-scaled by 1/sqrt(dh))
# ---------------------------------------------------------------------------
def ln_qkv_kernel(x_ref, gamma_ref, beta_ref, wqkv_ref, bqkv_ref, xn_ref, qkv_ref):
    x = x_ref[0]                                              # (ts, E) f32
    mu = jnp.mean(x, axis=-1, keepdims=True)
    var = jnp.mean((x - mu) ** 2, axis=-1, keepdims=True)     # biased var, eps = 1e-5
    xn = (x - mu) * jax.lax.rsqrt(var + 1e-5)
    xn = xn * gamma_ref[...] + beta_ref[...]
    xn_ref[0] = xn                                            # residual source (f32)
    qkv = jnp.dot(xn.astype(jnp.bfloat16), wqkv_ref[...],
                  preferred_element_type=jnp.float32) + bqkv_ref[...]
    qkv_ref[0] = qkv.astype(jnp.bfloat16)                     # (ts, 3E) lane-dense bf16


# ---------------------------------------------------------------------------
# Pass 2: head-batched attention + out-proj + MLP (residuals in f32)
# ---------------------------------------------------------------------------
def attn_mlp_kernel(xn_ref, q_ref, k_ref, v_ref, wo_ref, bo_ref,
                    w1_ref, b1_ref, w2_ref, b2_ref, out_ref):
    q3 = q_ref[0]                                             # (heads, ts, dh) bf16 (pre-scaled)
    k3 = k_ref[0]                                             # (heads, S,  dh) bf16
    v3 = v_ref[0]                                             # (heads, S,  dh) bf16
    heads = q3.shape[0]

    s = jnp.einsum('hqd,hkd->hqk', q3, k3,
                   preferred_element_type=jnp.float32)        # (heads, ts, S) f32
    s = s - jnp.max(s, axis=-1, keepdims=True)
    p = jnp.exp(s)
    denom = jnp.sum(p, axis=-1, keepdims=True)                # (heads, ts, 1) f32
    # Un-normalized context; normalize AFTER the PV matmul (heads*ts*dh << heads*ts*S work).
    ctx3 = jnp.einsum('hqk,hkd->hqd', p.astype(jnp.bfloat16), v3,
                      preferred_element_type=jnp.float32)     # (heads, ts, dh) f32
    inv = pl.reciprocal(denom, approx=True)                   # EUP slot

    # Fused head-merge + out-proj: sum_h ctx_h @ wo_h[h]  (wo pre-reshaped to (heads, dh, E)).
    acc = bo_ref[...]                                         # (1, E) f32
    for h in range(heads):
        ctx_h = (ctx3[h] * inv[h]).astype(jnp.bfloat16)       # (ts, dh)
        acc = acc + jnp.dot(ctx_h, wo_ref[h], preferred_element_type=jnp.float32)

    # TODO(synk): attention / output / MLP dropout omitted (eval-mode identity).
    y1 = xn_ref[0] + acc                                      # residual on normed x (per module)

    h1 = jnp.dot(y1.astype(jnp.bfloat16), w1_ref[...],
                 preferred_element_type=jnp.float32) + b1_ref[...]
    h1 = jax.nn.gelu(h1, approximate=False)                   # nn.GELU default (erf)
    y2 = y1 + (jnp.dot(h1.astype(jnp.bfloat16), w2_ref[...],
                       preferred_element_type=jnp.float32) + b2_ref[...])

    out_ref[0] = y2


# ---------------------------------------------------------------------------
# Wrapper
# ---------------------------------------------------------------------------
def _vmem_limit_bytes():
    cap = 64 * 1024 * 1024
    try:
        cap = int(pltpu.get_tpu_info().vmem_capacity_bytes)
    except Exception:
        pass
    # ~80% of physical VMEM: ~51 MiB on v7x (64 MiB), ~102 MiB on v5e/v6e (128 MiB).
    return max(32 * 1024 * 1024, min(int(cap * 0.8), 110 * 1024 * 1024))


def _resident_spec(shape, single_buffer):
    zeros = (0,) * len(shape)
    index_map = lambda b, t, _z=zeros: _z
    if single_buffer:
        # Constant index_map -> fetched once; single-buffering halves weight VMEM.
        return pl.BlockSpec(shape, index_map, pipeline_mode=pl.Buffered(1))
    return pl.BlockSpec(shape, index_map)


def _encoder_block(x, params, heads, seq_tile, single_buffer_weights):
    B, S, E = x.shape
    H = params["w1"].shape[1]
    assert E % heads == 0
    dh = E // heads
    assert S % seq_tile == 0 and (seq_tile % 8 == 0 or seq_tile == S)
    n_tiles = S // seq_tile

    vmem_limit = _vmem_limit_bytes()
    resident = lambda shape: _resident_spec(shape, single_buffer_weights)
    cparams = pltpu.CompilerParams(
        dimension_semantics=("parallel", "parallel"),
        vmem_limit_bytes=vmem_limit,
    )

    # ---- pass 1: LayerNorm + fused QKV (fully pipelined over (B, S tiles)) ----
    xn, qkv = pl.pallas_call(
        ln_qkv_kernel,
        out_shape=(jax.ShapeDtypeStruct((B, S, E), jnp.float32),
                   jax.ShapeDtypeStruct((B, S, 3 * E), jnp.bfloat16)),
        grid_spec=pltpu.PrefetchScalarGridSpec(
            num_scalar_prefetch=0,
            grid=(B, n_tiles),
            in_specs=[
                pl.BlockSpec((1, seq_tile, E), lambda b, t: (b, t, 0)),   # x tile
                resident((1, E)),                                         # gamma
                resident((1, E)),                                         # beta
                resident((E, 3 * E)),                                     # wqkv (Q pre-scaled)
                resident((1, 3 * E)),                                     # bqkv
            ],
            out_specs=[pl.BlockSpec((1, seq_tile, E), lambda b, t: (b, t, 0)),
                       pl.BlockSpec((1, seq_tile, 3 * E), lambda b, t: (b, t, 0))],
        ),
        compiler_params=cparams,
    )(x, params["gamma"], params["beta"], params["wqkv"], params["bqkv"])

    # ---- head split as a plain XLA HBM transpose (keeps both kernels lane-dense) ----
    q, k, v = jnp.split(qkv, 3, axis=-1)                       # each (B, S, E) bf16
    to_heads = lambda a: a.reshape(B, S, heads, dh).transpose(0, 2, 1, 3)  # (B, heads, S, dh)
    q, k, v = to_heads(q), to_heads(k), to_heads(v)

    # ---- pass 2: attention + out-proj + MLP ----
    out = pl.pallas_call(
        attn_mlp_kernel,
        out_shape=jax.ShapeDtypeStruct((B, S, E), jnp.float32),
        grid_spec=pltpu.PrefetchScalarGridSpec(
            num_scalar_prefetch=0,
            grid=(B, n_tiles),
            in_specs=[
                pl.BlockSpec((1, seq_tile, E), lambda b, t: (b, t, 0)),          # xn tile
                pl.BlockSpec((1, heads, seq_tile, dh), lambda b, t: (b, 0, t, 0)),  # q tile
                pl.BlockSpec((1, heads, S, dh), lambda b, t: (b, 0, 0, 0)),      # k (full seq)
                pl.BlockSpec((1, heads, S, dh), lambda b, t: (b, 0, 0, 0)),      # v (full seq)
                resident((heads, dh, E)),                                        # wo (head-split)
                resident((1, E)),                                                # bo
                resident((E, H)),                                                # w1
                resident((1, H)),                                                # b1
                resident((H, E)),                                                # w2
                resident((1, E)),                                                # b2
            ],
            out_specs=pl.BlockSpec((1, seq_tile, E), lambda b, t: (b, t, 0)),
        ),
        compiler_params=cparams,
    )(xn, q, k, v, params["wo_h"], params["bo"],
      params["w1"], params["b1"], params["w2"], params["b2"])
    return out


def transformer_encoder_block(x, params, heads, *, seq_tile=None):
    B, S, E = x.shape
    if seq_tile is None:
        seq_tile = min(S, 256)            # >=256 amortizes grid overhead / MXU RHS pushes
    try:
        out = _encoder_block(x, params, heads, seq_tile, single_buffer_weights=True)
        return jax.block_until_ready(out)
    except Exception:
        # TODO(synk): this JAX build rejected single-buffered weights (pl.Buffered(1));
        # fall back to default double-buffering (costs ~2x weight VMEM).
        out = _encoder_block(x, params, heads, seq_tile, single_buffer_weights=False)
        return jax.block_until_ready(out)


# ---------------------------------------------------------------------------
# Parameter init mirroring the PyTorch module layout
# ---------------------------------------------------------------------------
def init_params(key, embedding_dim, mlp_dim, heads):
    E, H = embedding_dim, mlp_dim
    dh = E // heads
    ks = jax.random.split(key, 8)
    std = 0.02
    # nn.MultiheadAttention in_proj_weight is (3E, E); PyTorch Linear computes x @ W.T, so the
    # kernel uses pre-transposed (in, out) weights.
    in_proj_w = jax.random.normal(ks[0], (3 * E, E), jnp.float32) * std
    in_proj_b = jax.random.normal(ks[1], (3 * E,), jnp.float32) * std
    wo = jax.random.normal(ks[2], (E, E), jnp.float32) * std
    bo = jax.random.normal(ks[3], (E,), jnp.float32) * std
    w1 = jax.random.normal(ks[4], (H, E), jnp.float32) * std
    b1 = jax.random.normal(ks[5], (H,), jnp.float32) * std
    w2 = jax.random.normal(ks[6], (E, H), jnp.float32) * std
    b2 = jax.random.normal(ks[7], (E,), jnp.float32) * std

    # Fold the 1/sqrt(dh) attention scale into the Q projection columns (free at init).
    scale = 1.0 / math.sqrt(dh)
    col_scale = jnp.concatenate([jnp.full((E,), scale, jnp.float32),
                                 jnp.ones((2 * E,), jnp.float32)])
    wqkv = in_proj_w.T * col_scale[None, :]          # (E, 3E)
    bqkv = in_proj_b * col_scale

    # out_proj weight pre-transposed and head-split: attn = sum_h ctx_h @ wo_h[h].
    wo_h = wo.T.reshape(heads, dh, E)

    return dict(
        gamma=jnp.ones((1, E), jnp.float32),
        beta=jnp.zeros((1, E), jnp.float32),
        # MXU operands stored in bf16; biases stay f32 (added to the f32 accumulator).
        wqkv=wqkv.astype(jnp.bfloat16),
        bqkv=bqkv.reshape(1, 3 * E),
        wo_h=wo_h.astype(jnp.bfloat16), bo=bo.reshape(1, E),
        w1=w1.T.astype(jnp.bfloat16), b1=b1.reshape(1, H),
        w2=w2.T.astype(jnp.bfloat16), b2=b2.reshape(1, E),
    )


if __name__ == "__main__":
    # Small but lane/sublane-aligned demo shapes.
    B, S, E, heads, mlp_dim = 2, 128, 128, 8, 256
    seq_tile = 64                                     # grid = (B, S // seq_tile) = (2, 2)

    key = jax.random.PRNGKey(0)
    k_x, k_p = jax.random.split(key)
    x = jax.random.normal(k_x, (B, S, E), jnp.float32)
    params = init_params(k_p, E, mlp_dim, heads)

    out = transformer_encoder_block(x, params, heads, seq_tile=seq_tile)
    out = jax.block_until_ready(out)
    assert out.shape == (B, S, E)
    assert bool(jnp.all(jnp.isfinite(out)))
    print("KERNEL_OK")
</pallas_src>

<mosaic_0001>
module attributes {stable_mosaic.version = 11 : i64} {
  func.func @ln_qkv_kernel(%arg0: i32, %arg1: i32, %arg2: memref<1x64x128xf32, #tpu.memory_space<vmem>>, %arg3: memref<1x128xf32, #tpu.memory_space<vmem>>, %arg4: memref<1x128xf32, #tpu.memory_space<vmem>>, %arg5: memref<128x384xbf16, #tpu.memory_space<vmem>>, %arg6: memref<1x384xf32, #tpu.memory_space<vmem>>, %arg7: memref<1x64x128xf32, #tpu.memory_space<vmem>>, %arg8: memref<1x64x384xbf16, #tpu.memory_space<vmem>>) attributes {dimension_semantics = [#tpu.dimension_semantics<parallel>, #tpu.dimension_semantics<parallel>], iteration_bounds = array<i64: 2, 2>, scalar_prefetch = 0 : i64, scratch_operands = 0 : i64, tpu.core_type = #tpu.core_type<tc>, window_params = [{transform_indices = @transform_0, window_bounds = array<i64: 1, 64, 128>}, {pipeline_mode = #tpu.pipeline_mode<synchronous>, transform_indices = @transform_1, window_bounds = array<i64: 1, 128>}, {pipeline_mode = #tpu.pipeline_mode<synchronous>, transform_indices = @transform_2, window_bounds = array<i64: 1, 128>}, {pipeline_mode = #tpu.pipeline_mode<synchronous>, transform_indices = @transform_3, window_bounds = array<i64: 128, 384>}, {pipeline_mode = #tpu.pipeline_mode<synchronous>, transform_indices = @transform_4, window_bounds = array<i64: 1, 384>}, {transform_indices = @transform_5, window_bounds = array<i64: 1, 64, 128>}, {transform_indices = @transform_6, window_bounds = array<i64: 1, 64, 384>}]} {
    %c0 = arith.constant 0 : index
    %c0_0 = arith.constant 0 : index
    %c0_1 = arith.constant 0 : index
    %0 = vector.load %arg2[%c0, %c0_0, %c0_1] : memref<1x64x128xf32, #tpu.memory_space<vmem>>, vector<1x64x128xf32>
    %1 = vector.shape_cast %0 : vector<1x64x128xf32> to vector<64x128xf32>
    %cst = arith.constant dense<0.000000e+00> : vector<64xf32>
    %2 = vector.multi_reduction <add>, %1, %cst [1] : vector<64x128xf32> to vector<64xf32>
    %3 = vector.shape_cast %2 : vector<64xf32> to vector<64x1xf32>
    %cst_2 = arith.constant 1.280000e+02 : f32
    %4 = vector.broadcast %cst_2 : f32 to vector<64x1xf32>
    %5 = arith.divf %3, %4 : vector<64x1xf32>
    %6 = vector.broadcast %5 : vector<64x1xf32> to vector<64x128xf32>
    %7 = arith.subf %1, %6 : vector<64x128xf32>
    %8 = arith.mulf %7, %7 : vector<64x128xf32>
    %cst_3 = arith.constant dense<0.000000e+00> : vector<64xf32>
    %9 = vector.multi_reduction <add>, %8, %cst_3 [1] : vector<64x128xf32> to vector<64xf32>
    %10 = vector.shape_cast %9 : vector<64xf32> to vector<64x1xf32>
    %cst_4 = arith.constant 1.280000e+02 : f32
    %11 = vector.broadcast %cst_4 : f32 to vector<64x1xf32>
    %12 = arith.divf %10, %11 : vector<64x1xf32>
    %13 = vector.broadcast %5 : vector<64x1xf32> to vector<64x128xf32>
    %14 = arith.subf %1, %13 : vector<64x128xf32>
    %cst_5 = arith.constant 9.99999974E-6 : f32
    %15 = vector.broadcast %cst_5 : f32 to vector<64x1xf32>
    %16 = arith.addf %12, %15 : vector<64x1xf32>
    %17 = math.rsqrt %16 : vector<64x1xf32>
    %18 = vector.broadcast %17 : vector<64x1xf32> to vector<64x128xf32>
    %19 = arith.mulf %14, %18 : vector<64x128xf32>
    %c0_6 = arith.constant 0 : index
    %c0_7 = arith.constant 0 : index
    %20 = vector.load %arg3[%c0_6, %c0_7] : memref<1x128xf32, #tpu.memory_space<vmem>>, vector<1x128xf32>
    %21 = vector.broadcast %20 : vector<1x128xf32> to vector<64x128xf32>
    %22 = arith.mulf %19, %21 : vector<64x128xf32>
    %c0_8 = arith.constant 0 : index
    %c0_9 = arith.constant 0 : index
    %23 = vector.load %arg4[%c0_8, %c0_9] : memref<1x128xf32, #tpu.memory_space<vmem>>, vector<1x128xf32>
    %24 = vector.broadcast %23 : vector<1x128xf32> to vector<64x128xf32>
    %25 = arith.addf %22, %24 : vector<64x128xf32>
    %c0_10 = arith.constant 0 : index
    %c0_11 = arith.constant 0 : index
    %c0_12 = arith.constant 0 : index
    %26 = vector.load %arg7[%c0_10, %c0_11, %c0_12] : memref<1x64x128xf32, #tpu.memory_space<vmem>>, vector<1x64x128xf32>
    %27 = vector.shape_cast %26 : vector<1x64x128xf32> to vector<64x128xf32>
    %28 = vector.shape_cast %25 : vector<64x128xf32> to vector<1x64x128xf32>
    tpu.vector_store %arg7[%c0_10, %c0_11, %c0_12], %28 {strides = array<i32>} : memref<1x64x128xf32, #tpu.memory_space<vmem>>, vector<1x64x128xf32>,
    %29 = arith.truncf %25 : vector<64x128xf32> to vector<64x128xbf16>
    %c0_13 = arith.constant 0 : index
    %c0_14 = arith.constant 0 : index
    %30 = vector.load %arg5[%c0_13, %c0_14] : memref<128x384xbf16, #tpu.memory_space<vmem>>, vector<128x384xbf16>
    %cst_15 = arith.constant dense<0.000000e+00> : vector<64x384xf32>
    %31 = tpu.matmul %29, %30, %cst_15 {dimension_numbers = #tpu.dot_dimension_numbers<[1], [0], [0], [1], [0, 0, 1, 1], [], []>} : vector<64x128xbf16>, vector<128x384xbf16>, vector<64x384xf32> -> vector<64x384xf32>
    %c0_16 = arith.constant 0 : index
    %c0_17 = arith.constant 0 : index
    %32 = vector.load %arg6[%c0_16, %c0_17] : memref<1x384xf32, #tpu.memory_space<vmem>>, vector<1x384xf32>
    %33 = vector.broadcast %32 : vector<1x384xf32> to vector<64x384xf32>
    %34 = arith.addf %31, %33 : vector<64x384xf32>
    %35 = arith.truncf %34 : vector<64x384xf32> to vector<64x384xbf16>
    %c0_18 = arith.constant 0 : index
    %c0_19 = arith.constant 0 : index
    %c0_20 = arith.constant 0 : index
    %36 = vector.load %arg8[%c0_18, %c0_19, %c0_20] : memref<1x64x384xbf16, #tpu.memory_space<vmem>>, vector<1x64x384xbf16>
    %37 = vector.shape_cast %36 : vector<1x64x384xbf16> to vector<64x384xbf16>
    %38 = vector.shape_cast %35 : vector<64x384xbf16> to vector<1x64x384xbf16>
    tpu.vector_store %arg8[%c0_18, %c0_19, %c0_20], %38 {strides = array<i32>} : memref<1x64x384xbf16, #tpu.memory_space<vmem>>, vector<1x64x384xbf16>,
    return
  }
  func.func @transform_0(%arg0: i32, %arg1: i32) -> (i32, i32, i32) {
    %c0_i32 = arith.constant 0 : i32
    %c0_i32_0 = arith.constant 0 : i32
    return %arg0, %arg1, %c0_i32 : i32, i32, i32
  }
  func.func @transform_1(%arg0: i32, %arg1: i32) -> (i32, i32) {
    %c0_i32 = arith.constant 0 : i32
    %c0_i32_0 = arith.constant 0 : i32
    %c0_i32_1 = arith.constant 0 : i32
    return %c0_i32, %c0_i32_0 : i32, i32
  }
  func.func @transform_2(%arg0: i32, %arg1: i32) -> (i32, i32) {
    %c0_i32 = arith.constant 0 : i32
    %c0_i32_0 = arith.constant 0 : i32
    %c0_i32_1 = arith.constant 0 : i32
    return %c0_i32, %c0_i32_0 : i32, i32
  }
  func.func @transform_3(%arg0: i32, %arg1: i32) -> (i32, i32) {
    %c0_i32 = arith.constant 0 : i32
    %c0_i32_0 = arith.constant 0 : i32
    %c0_i32_1 = arith.constant 0 : i32
    return %c0_i32, %c0_i32_0 : i32, i32
  }
  func.func @transform_4(%arg0: i32, %arg1: i32) -> (i32, i32) {
    %c0_i32 = arith.constant 0 : i32
    %c0_i32_0 = arith.constant 0 : i32
    %c0_i32_1 = arith.constant 0 : i32
    return %c0_i32, %c0_i32_0 : i32, i32
  }
  func.func @transform_5(%arg0: i32, %arg1: i32) -> (i32, i32, i32) {
    %c0_i32 = arith.constant 0 : i32
    %c0_i32_0 = arith.constant 0 : i32
    return %arg0, %arg1, %c0_i32 : i32, i32, i32
  }
  func.func @transform_6(%arg0: i32, %arg1: i32) -> (i32, i32, i32) {
    %c0_i32 = arith.constant 0 : i32
    %c0_i32_0 = arith.constant 0 : i32
    return %arg0, %arg1, %c0_i32 : i32, i32, i32
  }
}

module attributes {stable_mosaic.version = 11 : i64} {
  func.func @ln_qkv_kernel(%arg0: i32, %arg1: i32, %arg2: memref<1x64x128xf32, #tpu.memory_space<vmem>>, %arg3: memref<1x128xf32, #tpu.memory_space<vmem>>, %arg4: memref<1x128xf32, #tpu.memory_space<vmem>>, %arg5: memref<128x384xbf16, #tpu.memory_space<vmem>>, %arg6: memref<1x384xf32, #tpu.memory_space<vmem>>, %arg7: memref<1x64x128xf32, #tpu.memory_space<vmem>>, %arg8: memref<1x64x384xbf16, #tpu.memory_space<vmem>>) attributes {dimension_semantics = [#tpu.dimension_semantics<parallel>, #tpu.dimension_semantics<parallel>], iteration_bounds = array<i64: 2, 2>, scalar_prefetch = 0 : i64, scratch_operands = 0 : i64, tpu.core_type = #tpu.core_type<tc>, window_params = [{transform_indices = @transform_0, window_bounds = array<i64: 1, 64, 128>}, {pipeline_mode = #tpu.pipeline_mode<synchronous>, transform_indices = @transform_1, window_bounds = array<i64: 1, 128>}, {pipeline_mode = #tpu.pipeline_mode<synchronous>, transform_indices = @transform_2, window_bounds = array<i64: 1, 128>}, {pipeline_mode = #tpu.pipeline_mode<synchronous>, transform_indices = @transform_3, window_bounds = array<i64: 128, 384>}, {pipeline_mode = #tpu.pipeline_mode<synchronous>, transform_indices = @transform_4, window_bounds = array<i64: 1, 384>}, {transform_indices = @transform_5, window_bounds = array<i64: 1, 64, 128>}, {transform_indices = @transform_6, window_bounds = array<i64: 1, 64, 384>}]} {
    %c0 = arith.constant 0 : index
    %c0_0 = arith.constant 0 : index
    %c0_1 = arith.constant 0 : index
    %0 = vector.load %arg2[%c0, %c0_0, %c0_1] : memref<1x64x128xf32, #tpu.memory_space<vmem>>, vector<1x64x128xf32>
    %1 = vector.shape_cast %0 : vector<1x64x128xf32> to vector<64x128xf32>
    %cst = arith.constant dense<0.000000e+00> : vector<64xf32>
    %2 = vector.multi_reduction <add>, %1, %cst [1] : vector<64x128xf32> to vector<64xf32>
    %3 = vector.shape_cast %2 : vector<64xf32> to vector<64x1xf32>
    %cst_2 = arith.constant 1.280000e+02 : f32
    %4 = vector.broadcast %cst_2 : f32 to vector<64x1xf32>
    %5 = arith.divf %3, %4 : vector<64x1xf32>
    %6 = vector.broadcast %5 : vector<64x1xf32> to vector<64x128xf32>
    %7 = arith.subf %1, %6 : vector<64x128xf32>
    %8 = arith.mulf %7, %7 : vector<64x128xf32>
    %cst_3 = arith.constant dense<0.000000e+00> : vector<64xf32>
    %9 = vector.multi_reduction <add>, %8, %cst_3 [1] : vector<64x128xf32> to vector<64xf32>
    %10 = vector.shape_cast %9 : vector<64xf32> to vector<64x1xf32>
    %cst_4 = arith.constant 1.280000e+02 : f32
    %11 = vector.broadcast %cst_4 : f32 to vector<64x1xf32>
    %12 = arith.divf %10, %11 : vector<64x1xf32>
    %13 = vector.broadcast %5 : vector<64x1xf32> to vector<64x128xf32>
    %14 = arith.subf %1, %13 : vector<64x128xf32>
    %cst_5 = arith.constant 9.99999974E-6 : f32
    %15 = vector.broadcast %cst_5 : f32 to vector<64x1xf32>
    %16 = arith.addf %12, %15 : vector<64x1xf32>
    %17 = math.rsqrt %16 : vector<64x1xf32>
    %18 = vector.broadcast %17 : vector<64x1xf32> to vector<64x128xf32>
    %19 = arith.mulf %14, %18 : vector<64x128xf32>
    %c0_6 = arith.constant 0 : index
    %c0_7 = arith.constant 0 : index
    %20 = vector.load %arg3[%c0_6, %c0_7] : memref<1x128xf32, #tpu.memory_space<vmem>>, vector<1x128xf32>
    %21 = vector.broadcast %20 : vector<1x128xf32> to vector<64x128xf32>
    %22 = arith.mulf %19, %21 : vector<64x128xf32>
    %c0_8 = arith.constant 0 : index
    %c0_9 = arith.constant 0 : index
    %23 = vector.load %arg4[%c0_8, %c0_9] : memref<1x128xf32, #tpu.memory_space<vmem>>, vector<1x128xf32>
    %24 = vector.broadcast %23 : vector<1x128xf32> to vector<64x128xf32>
    %25 = arith.addf %22, %24 : vector<64x128xf32>
    %c0_10 = arith.constant 0 : index
    %c0_11 = arith.constant 0 : index
    %c0_12 = arith.constant 0 : index
    %26 = vector.load %arg7[%c0_10, %c0_11, %c0_12] : memref<1x64x128xf32, #tpu.memory_space<vmem>>, vector<1x64x128xf32>
    %27 = vector.shape_cast %26 : vector<1x64x128xf32> to vector<64x128xf32>
    %28 = vector.shape_cast %25 : vector<64x128xf32> to vector<1x64x128xf32>
    tpu.vector_store %arg7[%c0_10, %c0_11, %c0_12], %28 {strides = array<i32>} : memref<1x64x128xf32, #tpu.memory_space<vmem>>, vector<1x64x128xf32>,
    %29 = arith.truncf %25 : vector<64x128xf32> to vector<64x128xbf16>
    %c0_13 = arith.constant 0 : index
    %c0_14 = arith.constant 0 : index
    %30 = vector.load %arg5[%c0_13, %c0_14] : memref<128x384xbf16, #tpu.memory_space<vmem>>, vector<128x384xbf16>
    %cst_15 = arith.constant dense<0.000000e+00> : vector<64x384xf32>
    %31 = tpu.matmul %29, %30, %cst_15 {dimension_numbers = #tpu.dot_dimension_numbers<[1], [0], [0], [1], [0, 0, 1, 1], [], []>} : vector<64x128xbf16>, vector<128x384xbf16>, vector<64x384xf32> -> vector<64x384xf32>
    %c0_16 = arith.constant 0 : index
    %c0_17 = arith.constant 0 : index
    %32 = vector.load %arg6[%c0_16, %c0_17] : memref<1x384xf32, #tpu.memory_space<vmem>>, vector<1x384xf32>
    %33 = vector.broadcast %32 : vector<1x384xf32> to vector<64x384xf32>
    %34 = arith.addf %31, %33 : vector<64x384xf32>
    %35 = arith.truncf %34 : vector<64x384xf32> to vector<64x384xbf16>
    %c0_18 = arith.constant 0 : index
    %c0_19 = arith.constant 0 : index
    %c0_20 = arith.constant 0 : index
    %36 = vector.load %arg8[%c0_18, %c0_19, %c0_20] : memref<1x64x384xbf16, #tpu.memory_space<vmem>>, vector<1x64x384xbf16>
    %37 = vector.shape_cast %36 : vector<1x64x384xbf16> to vector<64x384xbf16>
    %38 = vector.shape_cast %35 : vector<64x384xbf16> to vector<1x64x384xbf16>
    tpu.vector_store %arg8[%c0_18, %c0_19, %c0_20], %38 {strides = array<i32>} : memref<1x64x384xbf16, #tpu.memory_space<vmem>>, vector<1x64x384xbf16>,
    return
  }
  func.func @transform_0(%arg0: i32, %arg1: i32) -> (i32, i32, i32) {
    %c0_i32 = arith.constant 0 : i32
    %c0_i32_0 = arith.constant 0 : i32
    return %arg0, %arg1, %c0_i32 : i32, i32, i32
  }
  func.func @transform_1(%arg0: i32, %arg1: i32) -> (i32, i32) {
    %c0_i32 = arith.constant 0 : i32
    %c0_i32_0 = arith.constant 0 : i32
    %c0_i32_1 = arith.constant 0 : i32
    return %c0_i32, %c0_i32_0 : i32, i32
  }
  func.func @transform_2(%arg0: i32, %arg1: i32) -> (i32, i32) {
    %c0_i32 = arith.constant 0 : i32
    %c0_i32_0 = arith.constant 0 : i32
    %c0_i32_1 = arith.constant 0 : i32
    return %c0_i32, %c0_i32_0 : i32, i32
  }
  func.func @transform_3(%arg0: i32, %arg1: i32) -> (i32, i32) {
    %c0_i32 = arith.constant 0 : i32
    %c0_i32_0 = arith.constant 0 : i32
    %c0_i32_1 = arith.constant 0 : i32
    return %c0_i32, %c0_i32_0 : i32, i32
  }
  func.func @transform_4(%arg0: i32, %arg1: i32) -> (i32, i32) {
    %c0_i32 = arith.constant 0 : i32
    %c0_i32_0 = arith.constant 0 : i32
    %c0_i32_1 = arith.constant 0 : i32
    return %c0_i32, %c0_i32_0 : i32, i32
  }
  func.func @transform_5(%arg0: i32, %arg1: i32) -> (i32, i32, i32) {
    %c0_i32 = arith.constant 0 : i32
    %c0_i32_0 = arith.constant 0 : i32
    return %arg0, %arg1, %c0_i32 : i32, i32, i32
  }
  func.func @transform_6(%arg0: i32, %arg1: i32) -> (i32, i32, i32) {
    %c0_i32 = arith.constant 0 : i32
    %c0_i32_0 = arith.constant 0 : i32
    return %arg0, %arg1, %c0_i32 : i32, i32, i32
  }
}

</mosaic_0001>

<bundles_post_ra>
// kernel: tpu_custom_call.1
= control target key start
LH: loop header
LB: loop body
LE: loop exit
PB: predicated region body
PF: predicated region fallthrough
CT: control target
= control target key end

     0   :  { %s1941_s0 = inlined_call_operand.hbm [shape: f32[2,128,128], index: 0, kind: input, shape index: {}]   ;;  %s1942_s1 = inlined_call_operand.vmem [shape: f32[1,128], index: 1, kind: input, shape index: {}]   ;;  %s1943_s2 = inlined_call_operand.vmem [shape: f32[1,128], index: 2, kind: input, shape index: {}]   ;;  %s1944_s3 = inlined_call_operand.hbm [shape: bf16[128,384], index: 3, kind: input, shape index: {}]   ;;  %s1945_s4 = inlined_call_operand.vmem [shape: f32[1,384], index: 4, kind: input, shape index: {}]   ;;  %s1946_s5 = inlined_call_operand.hbm [shape: f32[2,128,128], index: 5, kind: output, shape index: {0}]   ;;  %s1947_s6 = inlined_call_operand.hbm [shape: bf16[2,128,384], index: 6, kind: output, shape index: {1}]  }
   0x1   :  { %1958 = sst [smem:[#allocation19_spill]] %s1944_s3 }
   0x2   :  { %1959 = sst [smem:[#allocation20_spill]] %s1945_s4 }
   0x3   :  { %1960 = sst [smem:[#allocation21_spill]] %s1947_s6 }
   0x4   :  { %12 = vsyncpa [#allocation3], 0 }
   0x5   :  { %14 = vsyncpa [#allocation3 + $0x1], 0 }
   0x6   :  { %15 = vsyncpa [#allocation6], 0 }
   0x7   :  { %16 = vsyncpa [#allocation4], 0 }
   0x8   :  { %18 = vsyncpa [#allocation4 + $0x1], 0 }
   0x9   :  { %19 = vsyncpa [#allocation9], 0 }
   0xa   :  { %21 = vsyncpa [#allocation9 + $0x1], 0  ;;  %s1557_s21 = smov 0   ;;  %s1559_s22 = smov 0  }
   0xb   :  { %s1561_s23 = smov 0   ;;  %s1563_s24 = smov 0  }
   0xc   :  { %s1565_s25 = smov 0   ;;  %s1567_s26 = smov 0  }
   0xd   :  { %s1569_s27 = smov 0   ;;  %s1571_s28 = smov 0  }
   0xe LB: > { %1961 = sst [smem:[#allocation14_spill]] %s1479_s21  ;;  %s1045_s29 = sadd.s32 4294967295, %s1507_s28   ;;  %s1507_s28 = sphi %s1571_s28, %s27_s28   ;;  %s1503_s27 = sphi %s1569_s27, %s1992_s27   ;;  %s1499_s26 = sphi %s1567_s26, %s1986_s26   ;;  %s1495_s25 = sphi %s1565_s25, %s1991_s25   ;;  %s1491_s24 = sphi %s1563_s24, %s1985_s24   ;;  %s1487_s23 = sphi %s1561_s23, %s1990_s23   ;;  %s1483_s22 = sphi %s1559_s22, %s1989_s22   ;;  %s1479_s21 = sphi %s1557_s21, %s1988_s21  }
   0xf   : > { %1962 = sst [smem:[#allocation15_spill]] %s1499_s26  ;;  %s1046_s30 = sadd.s32 4294967294, %s1507_s28  }
  0x10   : > { %p61_p0 = scmp.ne.s32.totalorder %s1483_s22, %s1479_s21  ;;  %p1601_p1 = scmp.eq.s32.totalorder %s1045_s29, 0 }
  0x11   : > { %p1605_p2 = scmp.eq.s32.totalorder %s1045_s29, 3  ;;  %p177_p3 = scmp.eq.s32.totalorder %s1046_s30, 3 }
  0x12   : > { %s1963_s7 = scalar_select %p1601_p1, 1, 0 }
  0x13   : > { %s1964_s8 = scalar_select %p1605_p2, 1, 0 }
  0x14   : > { %p1611_p4 = por %p1601_p1, %p61_p0  ;;  %p1047_p5 = scmp.ge.s32.totalorder %s1507_s28, 1 }
  0x15   : > { %p1616_p6 = por %p177_p3, %p61_p0  ;;  %p212_p7 = scmp.lt.s32.totalorder %s1507_s28, 5 }
  0x16   : > { %s1965_s9 = scalar_select %p1611_p4, 1, 0 }
  0x17   : > { %s1966_s10 = scalar_select %p1616_p6, 1, 0 }
  0x18   : > { %p1621_p8 = pnand %p1047_p5, %p212_p7  ;;  %s1509_s12 = smov [#allocation5]  }
  0x19   : > { %1967 = sst [smem:[#allocation16_spill]] %s1966_s10  ;;  %s230_s13 = sshll.u32 %s1509_s12, 4  ;;  %s231_s13 = int_to_ptr.vmem [resolvable:$true] %s230_s13 }
  0x1a   : > { %s1968_s11 = scalar_select %p1621_p8, 1, 0 }
  0x1b   : > { %p1174_p9 = pneg %p1621_p8  ;;  %s1970_s3 = sld [smem:[#allocation19_spill]] }
  0x1d   : > { %p1629_p10 = pnand %p1174_p9, %p1601_p1 }
  0x1f   : > { %p1317_p12 = pneg %p1629_p10 }
  0x21   : > { %s1315_s17 = scalar_lea.hbm %s1970_s3, 3072 }
  0x22   : > { %p1316_p11 = scmp.ne.s32.totalorder %s1970_s3, %s1315_s17  ;;  %p1322_p3 = scmp.lt.u32.totalorder %s1315_s17, %s1970_s3 }
  0x24   : > { %p1318_p13 = pnand %p1317_p12, %p1316_p11 }
  0x26   : > { %p1319_p0 = pneg %p1318_p13 }
  0x28   : > { %p1324_p5 = pnand %p1322_p3, %p1319_p0 }
  0x2a   : > { %1327 = shalt.err (!%p1324_p5)
}
  0x2b   : > { %s1328_s30 = scalar_lea.vmem %s231_s13, 3072  ;;  %p1336_p1 = scmp.lt.s32.totalorder %s231_s13, %s231_s13 }
  0x2c   : > { %p1329_p7 = scmp.ne.s32.totalorder %s231_s13, %s1328_s30  ;;  %p1337_p4 = scmp.lt.s32.totalorder %s1328_s30, %s1328_s30 }
  0x2e   : > { %p1331_p9 = pnand %p1329_p7, %p1317_p12  ;;  %p1338_p8 = por %p1337_p4, %p1336_p1 }
  0x30   : > { %p1332_p6 = pneg %p1331_p9 }
  0x32   : > { %p1339_p2 = pnand %p1338_p8, %p1332_p6 }
  0x34   : > { %1342 = shalt.err (!%p1339_p2)
}
  0x35   : > { %s1510_s12 = smov 192   ;;  %s1511_s15 = smov 12  }
  0x36   : > { %1177 = dma.hbm_to_vmem [thread:$0]  (!%p1629_p10), %s1970_s3, 3072, %s231_s13, [#allocation6], %s1510_s12, %s1510_s12, %s1511_s15  }
  0x37   : > { %s36_s18 = sadd.s32 1, %s1499_s26  ;;  %s39_s19 = sadd.s32 1, %s1503_s27 }
  0x38   : > { %p37_p1 = scmp.ge.s32.totalorder %s36_s18, 2  ;;  %s48_s20 = sadd.s32 1, %s1487_s23 }
  0x39   : > { %p55_p2 = scmp.ne.s32.totalorder %s1487_s23, %s1483_s22  ;;  %p56_p4 = scmp.eq.s32.totalorder %s1507_s28, 0 }
  0x3a   : > { %s1994_s18 = smov (%p37_p1, %s36_s18), 0  ;;  %s1996_s19 = smov (!%p37_p1, %s39_s19), %s1503_s27 }
  0x3b   : > { %1971 = sst [smem:[#allocation17_spill]] %s1994_s18  ;;  %s44_s29 = ssub.s32 %s1499_s26, %s1994_s18 }
  0x3c   : > { %p41_p6 = scmp.ge.s32.totalorder %s1996_s19, 2  ;;  %p1972_p8 = scmp.ne.s32.totalorder %s1964_s8, 0 }
  0x3d   : > { %p1666_p10 = por %p56_p4, %p55_p2  ;;  %p1190_p12 = scmp.lt.s32.totalorder %s1507_s28, 4 }
  0x3e   : > { %p1662_p11 = por %p1972_p8, %p55_p2  ;;  %s1998_s19 = smov (%p41_p6, %s1996_s19), 0 }
  0x3f   : > { %1975 = sst [smem:[#allocation18_spill]] %s1998_s19  ;;  %s247_s30 = sand.u32 1, %s1487_s23  }
  0x40   : > { %s1051_s12 = sshll.u32 %s1499_s26, 3  ;;  %s43_s15 = ssub.s32 %s1503_s27, %s1998_s19 }
  0x41   : > { %s45_s16 = sor.u32 %s44_s29, %s43_s15  ;;  %s1050_s17 = sshll.u32 %s247_s30, 6 }
  0x42   : > { %p46_p13 = scmp.eq.s32.totalorder %s45_s16, 0  ;;  %s1052_s8 = sshll.u32 %s1503_s27, 4 }
  0x43   : > { %s251_s3 = scalar_lea.vmem [#allocation2], %s1050_s17  ;;  %s257_s21 = sadd.s32 %s1052_s8, %s1051_s12 }
  0x44   : > { %s260_s18 = sshll.u32 %s251_s3, 4  ;;  %s1053_s6 = sshll.u32 %s257_s21, 7  ;;  %s1681_s18 = int_to_ptr.vmem [resolvable:$true] %s260_s18 }
  0x45   : > { %s1679_s10 = scalar_select %p46_p13, %s1487_s23, %s48_s20  }
  0x46   : > { %p1687_p0 = pnand %p1190_p12, %p1666_p10  ;;  %s1694_s29 = scalar_lea.hbm %s1941_s0, %s1053_s6 }
  0x47   : > { %s1696_s3 = scalar_lea.sflag [#allocation3], %s247_s30  ;;  %s1343_s21 = scalar_lea.hbm %s1694_s29, 1024 }
  0x48   : > { %p1344_p3 = scmp.ne.s32.totalorder %s1694_s29, %s1343_s21  ;;  %p1345_p5 = pneg %p1687_p0 }
  0x49   : > { %s1348_s19 = scalar_lea.hbm %s1941_s0, 4096  ;;  %p1349_p1 = scmp.lt.u32.totalorder %s1694_s29, %s1941_s0 }
  0x4a   : > { %p1346_p7 = pnand %p1345_p5, %p1344_p3  ;;  %p1350_p2 = scmp.lt.u32.totalorder %s1348_s19, %s1343_s21 }
  0x4b   : > { %p1352_p6 = scmp.lt.u32.totalorder %s1343_s21, %s1694_s29 }
  0x4c   : > { %p1347_p9 = pneg %p1346_p7  ;;  %p1351_p4 = por %p1350_p2, %p1349_p1 }
  0x4e   : > { %p1353_p8 = por %p1352_p6, %p1351_p4 }
  0x50   : > { %p1354_p10 = pnand %p1353_p8, %p1347_p9 }
  0x52   : > { %1357 = shalt.err (!%p1354_p10)
}
  0x53   : > { %s1358_s30 = scalar_lea.vmem %s1681_s18, 1024  ;;  %s1512_s12 = smov [#allocation2]  }
  0x54   : > { %p1359_p12 = scmp.ne.s32.totalorder %s1681_s18, %s1358_s30  ;;  %s1363_s15 = sshll.u32 %s1512_s12, 4  ;;  %s1364_s15 = int_to_ptr.vmem [resolvable:$false] %s1363_s15 }
  0x55   : > { %s1365_s16 = scalar_lea.vmem %s1364_s15, 2048  ;;  %p1366_p7 = scmp.lt.s32.totalorder %s1681_s18, %s1364_s15 }
  0x56   : > { %p1361_p13 = pnand %p1359_p12, %p1345_p5  ;;  %p1367_p1 = scmp.lt.s32.totalorder %s1365_s16, %s1358_s30 }
  0x58   : > { %p1362_p3 = pneg %p1361_p13  ;;  %p1368_p2 = por %p1367_p1, %p1366_p7 }
  0x5a   : > { %p1369_p4 = pnand %p1368_p2, %p1362_p3 }
  0x5c   : > { %1372 = shalt.err (!%p1369_p4)
}
  0x5d   : > { %s1513_s17 = smov 128   ;;  %s1514_s8 = smov 8  }
  0x5e   : > { %1181 = dma.hbm_to_vmem [thread:$0]  (!%p1687_p0), %s1694_s29, 1024, %s1681_s18, %s1696_s3, %s1513_s17, %s1513_s17, %s1514_s8  }
  0x5f   : > { %p1977_p5 = scmp.ne.s32.totalorder %s1968_s11, 0 }
  0x60   : > { %s1727_s21 = sand.u32 (!%p1977_p5), 1, %s1483_s22   ;;  %p1978_p9 = scmp.ne.s32.totalorder (!%p1977_p5), %s1965_s9, 0 }
  0x61   : > { %272 = sbr.rel (%p1977_p5) target bundleno = 684 (0x2ac), region = 40  ;;  %s1055_s20 = sshll.u32 (!%p1977_p5), %s1727_s21, 6 }
  0x62   : > { %s275_s26 = scalar_lea.sflag (!%p1977_p5), [#allocation3], %s1727_s21  ;;  %s278_s19 = scalar_lea.vmem (!%p1977_p5), [#allocation2], %s1055_s20 }
  0x68   : > { %1462 = dma.done.wait (%p1978_p9), %s275_s26, 1024  }
  0x69   : > { %1464 = vsyncadd (%p1978_p9), %s275_s26, 4294966272  ;;  %p1979_p0 = scmp.ne.s32.totalorder %s1963_s7, 0 }
  0x6b   : > { %1466 = dma.done.wait (%p1979_p0), [#allocation6], 3072  }
  0x6c   : > { %1468 = vsyncadd (%p1979_p0), [#allocation6], 4294964224  ;;  %v320_v0 = vld [vmem:[%s278_s19] sm:$0xff]  ;;  %v322_v1 = vld [vmem:[%s278_s19 + $0x10] sm:$0xff]  ;;  %v1515_v63 = vmov 0   ;;  %s1785_s18 = scalar_lea.vmem [#allocation7], %s1055_s20 }
  0x6d   : > { %328 = vadd.xlane.f32.xlu0 %v320_v0  ;;  %332 = vadd.xlane.f32.xlu1 %v322_v1  ;;  %v321_v2 = vld [vmem:[%s278_s19 + $0x8] sm:$0xff]  ;;  %v323_v3 = vld [vmem:[%s278_s19 + $0x18] sm:$0xff]  ;;  %v324_v4 = vld [vmem:[%s278_s19 + $0x20] sm:$0xff]  ;;  %s1101_s29 = sshll.u32 %s1491_s24, 3  ;;  %s1102_s3 = sshll.u32 %s1495_s25, 4 }
  0x6e   : > { %v325_v5 = vld [vmem:[%s278_s19 + $0x28] sm:$0xff]  ;;  %v326_v6 = vld [vmem:[%s278_s19 + $0x30] sm:$0xff]  ;;  %v327_v7 = vld [vmem:[%s278_s19 + $0x38] sm:$0xff]  ;;  %668 = vmatprep.mubr.bf16.mxu0 %v1515_v63  ;;  %s888_s6 = sadd.s32 %s1102_s3, %s1101_s29  ;;  %s891_s16 = sshll.u32 %s1785_s18, 4  ;;  %s1811_s16 = int_to_ptr.vmem [resolvable:$true] %s891_s16 }
  0x6f   : > { %v1267_v8 = vld [vmem:[#allocation5 + $0x4] ss:$12 sps:$4 sm:$0xff]   ;;  %v1269_v9 = vld [vmem:[#allocation5] ss:$12 sps:$4 sm:$0xff]   ;;  %v1270_v10 = vld [vmem:[#allocation5 + $0x1c] ss:$12 sps:$4 sm:$0xff]  }
  0x70   : > { %v1272_v11 = vld [vmem:[#allocation5 + $0x8] ss:$12 sps:$4 sm:$0xff]   ;;  %636 = vmatprep.subr.bf16.mxu0 %v1267_v8  ;;  %v1273_v44 = vld [vmem:[#allocation5 + $0x18] ss:$12 sps:$4 sm:$0xff]   ;;  %v1276_v46 = vld [vmem:[#allocation5 + $0x20] ss:$12 sps:$4 sm:$0xff]  }
  0x71   : > { %330 = vadd.xlane.f32.xlu0 %v321_v2  ;;  %334 = vadd.xlane.f32.xlu1 %v323_v3  ;;  %v1274_v45 = vld [vmem:[#allocation5 + $0x34] ss:$12 sps:$4 sm:$0xff]   ;;  %v1277_v47 = vld [vmem:[#allocation5 + $0x30] ss:$12 sps:$4 sm:$0xff]   ;;  %v1278_v48 = vld [vmem:[#allocation5 + $0x4c] ss:$12 sps:$4 sm:$0xff]  }
  0x72   : > { %637 = vmatpush1.bf16.msra.mxu0 %v1269_v9  ;;  %1137 = vmatprep.subr.bf16.mxu1 %v1272_v11  ;;  %v1280_v49 = vld [vmem:[#allocation5 + $0x38] ss:$12 sps:$4 sm:$0xff]   ;;  %v1281_v50 = vld [vmem:[#allocation5 + $0x48] ss:$12 sps:$4 sm:$0xff]   ;;  %v1284_v52 = vld [vmem:[#allocation5 + $0x50] ss:$12 sps:$4 sm:$0xff]  }
  0x73   : > { %638 = vmatprep.subr.bf16.mxu0 %v1270_v10  ;;  %1138 = vmatpush3.bf16.msra.mxu1 %v1272_v11  ;;  %v1282_v51 = vld [vmem:[#allocation5 + $0x64] ss:$12 sps:$4 sm:$0xff]   ;;  %v1285_v53 = vld [vmem:[#allocation5 + $0x60] ss:$12 sps:$4 sm:$0xff]   ;;  %v1286_v54 = vld [vmem:[#allocation5 + $0x7c] ss:$12 sps:$4 sm:$0xff]  }
  0x74   : > { %1139 = vmatprep.subr.bf16.mxu1 %v1276_v46  ;;  %v1288_v55 = vld [vmem:[#allocation5 + $0x68] ss:$12 sps:$4 sm:$0xff]   ;;  %v1289_v56 = vld [vmem:[#allocation5 + $0x78] ss:$12 sps:$4 sm:$0xff]   ;;  %v1292_v58 = vld [vmem:[#allocation5 + $0x80] ss:$12 sps:$4 sm:$0xff]  }
  0x75   : > { %336 = vadd.xlane.f32.xlu0 %v324_v4  ;;  %338 = vadd.xlane.f32.xlu1 %v325_v5  ;;  %v1290_v57 = vld [vmem:[#allocation5 + $0x94] ss:$12 sps:$4 sm:$0xff]   ;;  %v1293_v59 = vld [vmem:[#allocation5 + $0x90] ss:$12 sps:$4 sm:$0xff]   ;;  %v1294_v60 = vld [vmem:[#allocation5 + $0xac] ss:$12 sps:$4 sm:$0xff]  }
  0x76   : > { %639 = vmatpush1.bf16.msra.mxu0 %v1273_v44  ;;  %v1296_v61 = vld [vmem:[#allocation5 + $0x98] ss:$12 sps:$4 sm:$0xff]   ;;  %v1297_v62 = vld [vmem:[#allocation5 + $0xa8] ss:$12 sps:$4 sm:$0xff]   ;;  %s1103_s13 = sshll.u32 %s888_s6, 7  ;;  %s871_s17 = scalar_lea.sflag [#allocation4], %s1727_s21 }
  0x77   : > { %640 = vmatprep.subr.bf16.mxu0 %v1274_v45  ;;  %1140 = vmatpush3.bf16.msra.mxu1 %v1276_v46  ;;  %s1808_s15 = scalar_lea.hbm %s1946_s5, %s1103_s13  ;;  %s1373_s8 = scalar_lea.vmem %s1811_s16, 1024 }
  0x78   : > { %1141 = vmatprep.subr.bf16.mxu1 %v1280_v49  ;;  %p1374_p6 = scmp.ne.s32.totalorder %s1811_s16, %s1373_s8  ;;  %s1516_s20 = smov [#allocation7]  }
  0x79   : > { %340 = vadd.xlane.f32.xlu0 %v326_v6  ;;  %342 = vadd.xlane.f32.xlu1 %v327_v7  ;;  %s1377_s26 = sshll.u32 %s1516_s20, 4  ;;  %s1378_s26 = int_to_ptr.vmem [resolvable:$false] %s1377_s26 }
  0x7a   : > { %641 = vmatpush1.bf16.msra.mxu0 %v1277_v47  ;;  %p1375_p8 = pnand %p1374_p6, %p1662_p11  ;;  %s1379_s19 = scalar_lea.vmem %s1378_s26, 2048 }
  0x7b   : > { %642 = vmatprep.subr.bf16.mxu0 %v1278_v48  ;;  %1142 = vmatpush3.bf16.msra.mxu1 %v1280_v49  ;;  %p1380_p12 = scmp.lt.s32.totalorder %s1811_s16, %s1378_s26  ;;  %p1381_p13 = scmp.lt.s32.totalorder %s1379_s19, %s1373_s8 }
  0x7c   : > { %1143 = vmatprep.subr.bf16.mxu1 %v1284_v52  ;;  %p1376_p10 = pneg %p1375_p8 }
  0x7d   : > { %p1382_p3 = por %p1381_p13, %p1380_p12 }
  0x7e   : > { %643 = vmatpush1.bf16.msra.mxu0 %v1281_v50 }
  0x7f   : > { %644 = vmatprep.subr.bf16.mxu0 %v1282_v51  ;;  %1144 = vmatpush3.bf16.msra.mxu1 %v1284_v52  ;;  %p1383_p7 = pnand %p1382_p3, %p1376_p10 }
  0x80   : > { %1145 = vmatprep.subr.bf16.mxu1 %v1288_v55 }
  0x82   : > { %645 = vmatpush1.bf16.msra.mxu0 %v1285_v53 }
  0x83   : > { %646 = vmatprep.subr.bf16.mxu0 %v1286_v54  ;;  %1146 = vmatpush3.bf16.msra.mxu1 %v1288_v55 }
  0x84   : > { %1147 = vmatprep.subr.bf16.mxu1 %v1292_v58 }
  0x86   : > { %647 = vmatpush1.bf16.msra.mxu0 %v1289_v56 }
  0x87   : > { %648 = vmatprep.subr.bf16.mxu0 %v1290_v57  ;;  %1148 = vmatpush3.bf16.msra.mxu1 %v1292_v58 }
  0x88   : > { %1149 = vmatprep.subr.bf16.mxu1 %v1296_v61 }
  0x8a   : > { %649 = vmatpush1.bf16.msra.mxu0 %v1293_v59 }
  0x8b   : > { %650 = vmatprep.subr.bf16.mxu0 %v1294_v60  ;;  %1150 = vmatpush3.bf16.msra.mxu1 %v1296_v61 }
  0x8e   : > { %651 = vmatpush1.bf16.msra.mxu0 %v1297_v62 }
  0xfa   : > { %v329_v12 = vpop.xlane.xlu0 %328  ;;  %v333_v13 = vpop.xlane.xlu1 %332 }
  0xfb   : > { %v345_v14 = vmul.f32 0.0078125, %v329_v12  ;;  %v347_v15 = vmul.f32 0.0078125, %v333_v13 }
  0xfd   : > { %v1741_v16 = vsub.f32 %v320_v0, %v345_v14  ;;  %v1743_v17 = vsub.f32 %v322_v1, %v347_v15  ;;  %v1298_v0 = vld [vmem:[#allocation5 + $0xb0] ss:$12 sps:$4 sm:$0xff]  }
  0xfe   : > { %v331_v18 = vpop.xlane.xlu0 %330  ;;  %v335_v19 = vpop.xlane.xlu1 %334  ;;  %1151 = vmatprep.subr.bf16.mxu1 %v1298_v0 }
  0xff   : > { %v346_v20 = vmul.f32 0.0078125, %v331_v18  ;;  %v361_v21 = vmul.f32 %v1741_v16, %v1741_v16  ;;  %v348_v22 = vmul.f32 0.0078125, %v335_v19  ;;  %v363_v25 = vmul.f32 %v1743_v17, %v1743_v17  ;;  %1152 = vmatpush3.bf16.msra.mxu1 %v1298_v0 }
 0x101   : > { %v1747_v23 = vsub.f32 %v321_v2, %v346_v20  ;;  %369 = vadd.xlane.f32.xlu0 %v361_v21  ;;  %v1749_v24 = vsub.f32 %v323_v3, %v348_v22 }
 0x102   : > { %v337_v26 = vpop.xlane.xlu0 %336  ;;  %v339_v27 = vpop.xlane.xlu1 %338 }
 0x103   : > { %v349_v28 = vmul.f32 0.0078125, %v337_v26  ;;  %v362_v29 = vmul.f32 %v1747_v23, %v1747_v23  ;;  %v350_v30 = vmul.f32 0.0078125, %v339_v27  ;;  %v364_v33 = vmul.f32 %v1749_v24, %v1749_v24  ;;  %v1058_v27 = vld [vmem:[%s1942_s1] ss:$0 sm:$0xff] }
 0x105   : > { %v1755_v31 = vsub.f32 %v324_v4, %v349_v28  ;;  %373 = vadd.xlane.f32.xlu0 %v363_v25  ;;  %371 = vadd.xlane.f32.xlu1 %v362_v29  ;;  %v1757_v32 = vsub.f32 %v325_v5, %v350_v30 }
 0x106   : > { %v341_v34 = vpop.xlane.xlu0 %340  ;;  %v343_v35 = vpop.xlane.xlu1 %342 }
 0x107   : > { %v351_v36 = vmul.f32 0.0078125, %v341_v34  ;;  %v365_v37 = vmul.f32 %v1755_v31, %v1755_v31  ;;  %v352_v38 = vmul.f32 0.0078125, %v343_v35  ;;  %v366_v41 = vmul.f32 %v1757_v32, %v1757_v32 }
 0x109   : > { %v1763_v39 = vsub.f32 %v326_v6, %v351_v36  ;;  %375 = vadd.xlane.f32.xlu1 %v364_v33  ;;  %377 = vadd.xlane.f32.xlu0 %v365_v37  ;;  %v1765_v40 = vsub.f32 %v327_v7, %v352_v38  ;;  %v1059_v33 = vld [vmem:[%s1943_s2] ss:$0 sm:$0xff] }
 0x10b   : > { %v367_v42 = vmul.f32 %v1763_v39, %v1763_v39  ;;  %v368_v43 = vmul.f32 %v1765_v40, %v1765_v40 }
 0x10d   : > { %379 = vadd.xlane.f32.xlu1 %v366_v41  ;;  %381 = vadd.xlane.f32.xlu0 %v367_v42 }
 0x111   : > { %383 = vadd.xlane.f32.xlu1 %v368_v43 }
 0x18e   : > { %v370_v1 = vpop.xlane.xlu0 %369 }
 0x18f   : > { %v385_v2 = vmul.f32 0.0078125, %v370_v1 }
 0x191   : > { %v393_v3 = vadd.f32 1e-05, %v385_v2 }
 0x192   : > { %v372_v4 = vpop.xlane.xlu1 %371  ;;  %v374_v5 = vpop.xlane.xlu0 %373 }
 0x193   : > { %1299 = vrsqrt.f32 %v393_v3  ;;  %v386_v6 = vmul.f32 0.0078125, %v372_v4  ;;  %v387_v7 = vmul.f32 0.0078125, %v374_v5 }
 0x195   : > { %v394_v8 = vadd.f32 1e-05, %v386_v6  ;;  %v395_v9 = vadd.f32 1e-05, %v387_v7 }
 0x196   : > { %v376_v10 = vpop.xlane.xlu1 %375  ;;  %v378_v11 = vpop.xlane.xlu0 %377 }
 0x197   : > { %1301 = vrsqrt.f32 %v394_v8  ;;  %v388_v12 = vmul.f32 0.0078125, %v376_v10  ;;  %v389_v13 = vmul.f32 0.0078125, %v378_v11 }
 0x198   : > { %1303 = vrsqrt.f32 %v395_v9 }
 0x199   : > { %v396_v14 = vadd.f32 1e-05, %v388_v12  ;;  %v397_v15 = vadd.f32 1e-05, %v389_v13 }
 0x19a   : > { %v380_v18 = vpop.xlane.xlu1 %379  ;;  %v382_v19 = vpop.xlane.xlu0 %381 }
 0x19b   : > { %1305 = vrsqrt.f32 %v396_v14  ;;  %v390_v20 = vmul.f32 0.0078125, %v380_v18  ;;  %v391_v21 = vmul.f32 0.0078125, %v382_v19 }
 0x19c   : > { %1307 = vrsqrt.f32 %v397_v15 }
 0x19d   : > { %v1300_v22 = vpop.eup %1299  ;;  %v398_v25 = vadd.f32 1e-05, %v390_v20  ;;  %v399_v26 = vadd.f32 1e-05, %v391_v21 }
 0x19e   : > { %v384_v28 = vpop.xlane.xlu1 %383  ;;  %v409_v29 = vmul.f32 %v1300_v22, %v1741_v16 }
 0x19f   : > { %1309 = vrsqrt.f32 %v398_v25  ;;  %v392_v30 = vmul.f32 0.0078125, %v384_v28 }
 0x1a0   : > { %1311 = vrsqrt.f32 %v399_v26  ;;  %v424_v34 = vmul.f32 %v1058_v27, %v409_v29 }
 0x1a1   : > { %v1302_v35 = vpop.eup %1301  ;;  %v400_v36 = vadd.f32 1e-05, %v392_v30 }
 0x1a2   : > { %v1304_v37 = vpop.eup %1303  ;;  %v410_v38 = vmul.f32 %v1302_v35, %v1747_v23  ;;  %v439_v41 = vadd.f32 %v1059_v33, %v424_v34 }
 0x1a3   : > { %1313 = vrsqrt.f32 %v400_v36  ;;  %v411_v42 = vmul.f32 %v1304_v37, %v1743_v17 }
 0x1a4   : > { %v425_v43 = vmul.f32 %v1058_v27, %v410_v38  ;;  %447 = vst [vmem:[%s1785_s18] sm:$0xff] %v439_v41 }
 0x1a5   : > { %v1306_v16 = vpop.eup %1305  ;;  %v426_v44 = vmul.f32 %v1058_v27, %v411_v42 }
 0x1a6   : > { %v1308_v45 = vpop.eup %1307  ;;  %v440_v46 = vadd.f32 %v1059_v33, %v425_v43  ;;  %v412_v47 = vmul.f32 %v1306_v16, %v1749_v24 }
 0x1a7   : > { %v441_v48 = vadd.f32 %v1059_v33, %v426_v44  ;;  %v413_v23 = vmul.f32 %v1308_v45, %v1755_v31 }
 0x1a8   : > { %448 = vst [vmem:[%s1785_s18 + $0x8] sm:$0xff] %v440_v46  ;;  %v455_v17 = vpack.c.bf16 %v440_v46, %v439_v41  ;;  %v427_v49 = vmul.f32 %v1058_v27, %v412_v47 }
 0x1a9   : > { %v1310_v50 = vpop.eup %1309  ;;  %449 = vst [vmem:[%s1785_s18 + $0x10] sm:$0xff] %v441_v48  ;;  %v428_v51 = vmul.f32 %v1058_v27, %v413_v23 }
 0x1aa   : > { %v1312_v52 = vpop.eup %1311  ;;  %669 = vmatmul.mubr.bf16.vlgmr.msra.gmra.mrb[0].mxu0 %v455_v17  ;;  %1153 = vmatprep.mubr.bf16.mxu1 %v455_v17  ;;  %v442_v53 = vadd.f32 %v1059_v33, %v427_v49  ;;  %v414_v54 = vmul.f32 %v1310_v50, %v1757_v32 }
 0x1ab   : > { %678 = vmatprep.mubr.bf16.mxu0 %v1515_v63  ;;  %v443_v24 = vadd.f32 %v1059_v33, %v428_v51  ;;  %v415_v31 = vmul.f32 %v1312_v52, %v1763_v39 }
 0x1ac   : > { %450 = vst [vmem:[%s1785_s18 + $0x18] sm:$0xff] %v442_v53  ;;  %v456_v55 = vpack.c.bf16 %v442_v53, %v441_v48  ;;  %v429_v56 = vmul.f32 %v1058_v27, %v414_v54 }
 0x1ad   : > { %v1314_v57 = vpop.eup %1313  ;;  %451 = vst [vmem:[%s1785_s18 + $0x20] sm:$0xff] %v443_v24  ;;  %v430_v58 = vmul.f32 %v1058_v27, %v415_v31 }
 0x1ae   : > { %1154 = vmatmul.mubr.bf16.vlgmr.msra.gmra.mrb[0].mxu1 %v456_v55  ;;  %v444_v59 = vadd.f32 %v1059_v33, %v429_v56  ;;  %v416_v60 = vmul.f32 %v1314_v57, %v1765_v40 }
 0x1af   : > { %v445_v61 = vadd.f32 %v1059_v33, %v430_v58 }
 0x1b0   : > { %452 = vst [vmem:[%s1785_s18 + $0x28] sm:$0xff] %v444_v59  ;;  %v457_v32 = vpack.c.bf16 %v444_v59, %v443_v24  ;;  %v431_v62 = vmul.f32 %v1058_v27, %v416_v60 }
 0x1b1   : > { %453 = vst [vmem:[%s1785_s18 + $0x30] sm:$0xff] %v445_v61 }
 0x1b2   : > { %679 = vmatmul.mubr.bf16.gmra.mrb[4].mxu0 %v456_v55  ;;  %1157 = vmatprep.mubr.bf16.mxu1 %v457_v32  ;;  %v446_v39 = vadd.f32 %v1059_v33, %v431_v62 }
 0x1b3   : > { %688 = vmatprep.mubr.bf16.mxu0 %v1515_v63 }
 0x1b4   : > { %454 = vst [vmem:[%s1785_s18 + $0x38] sm:$0xff] %v446_v39  ;;  %v458_v0 = vpack.c.bf16 %v446_v39, %v445_v61 }
 0x1b6   : > { %1158 = vmatmul.mubr.bf16.gmra.mrb[4].mxu1 %v458_v0 }
 0x1ba   : > { %689 = vmatmul.mubr.bf16.gmra.mrb[8].mxu0 %v457_v32 }
 0x1bb   : > { %698 = vmatprep.mubr.bf16.mxu0 %v1515_v63 }
 0x1c2   : > { %699 = vmatmul.mubr.bf16.gmra.mrb[12].mxu0 %v458_v0 }
 0x1c3   : > { %1386 = shalt.err (!%p1383_p7)
}
 0x1c4   : > { %s1387_s4 = scalar_lea.hbm %s1808_s15, 1024  ;;  %s1391_s11 = scalar_lea.hbm %s1946_s5, 4096 }
 0x1c5   : > { %p1388_p1 = scmp.ne.s32.totalorder %s1808_s15, %s1387_s4  ;;  %p1392_p5 = scmp.lt.u32.totalorder %s1808_s15, %s1946_s5 }
 0x1c6   : > { %p1393_p9 = scmp.lt.u32.totalorder %s1391_s11, %s1387_s4  ;;  %p1395_p6 = scmp.lt.u32.totalorder %s1387_s4, %s1808_s15 }
 0x1c7   : > { %p1389_p2 = pnand %p1388_p1, %p1662_p11 }
 0x1c8   : > { %p1394_p0 = por %p1393_p9, %p1392_p5 }
 0x1c9   : > { %p1390_p4 = pneg %p1389_p2 }
 0x1ca   : > { %p1396_p8 = por %p1395_p6, %p1394_p0 }
 0x1cc   : > { %p1397_p10 = pnand %p1396_p8, %p1390_p4 }
 0x1ce   : > { %1400 = shalt.err (!%p1397_p10)
}
 0x1cf   : > { %s1517_s3 = smov 128   ;;  %s1518_s6 = smov 8   ;;  %v493_v40 = vlaneseq }
 0x1d0   : > { %1170 = dma.vmem_to_hbm [thread:$0]  (%p1662_p11), %s1811_s16, 1024, %s1808_s15, %s871_s17, %s1517_s3, %s1517_s3, %s1518_s6  }
 0x1d1   : > { %v494_v63 = vshrl.u32 %v493_v40, 7  ;;  %s1980_s12 = sld [smem:[#allocation20_spill]]  ;;  %s1161_s8 = smul.u32 96, %s1727_s21 }
 0x1d2   : > { %s1162_s16 = smul.u32 24, %s1491_s24  ;;  %s1981_s4 = sld [smem:[#allocation21_spill]] }
 0x1d3   : > { %v495_v1 = vsub.s32 0, %v494_v63  ;;  %v499_v3 = vsub.s32 1, %v494_v63  ;;  %v503_v5 = vsub.s32 2, %v494_v63  ;;  %s1849_s15 = scalar_lea.vmem [#allocation8], %s1161_s8  ;;  %s1163_s17 = smul.u32 48, %s1495_s25 }
 0x1d4   : > { %s910_s25 = sshll.u32 %s1849_s15, 4  ;;  %s876_s9 = scalar_lea.sflag [#allocation9], %s1727_s21  ;;  %s1885_s25 = int_to_ptr.vmem [resolvable:$true] %s910_s25 }
 0x1d5   : > { %s907_s20 = sadd.s32 %s1163_s17, %s1162_s16  ;;  %s1401_s11 = scalar_lea.vmem %s1885_s25, 1536 }
 0x1d6   : > { %s1106_s24 = sshll.u32 %s907_s20, 6  ;;  %p1402_p12 = scmp.ne.s32.totalorder %s1885_s25, %s1401_s11 }
 0x1d7   : > { %v491_v2 = vld [vmem:[%s1980_s12] sm:$0x7]  ;;  %s1519_s18 = smov [#allocation8]  }
 0x1d8   : > { %v1840_v4 = vrot.slane %v491_v2, %v495_v1  ;;  %v1842_v6 = vrot.slane %v491_v2, %v499_v3  ;;  %v504_v10 = vrot.slane %v491_v2, %v503_v5  ;;  %s1883_s7 = scalar_lea.hbm %s1981_s4, %s1106_s24  ;;  %p1403_p13 = pnand %p1402_p12, %p1662_p11 }
 0x1d9   : > { %s1405_s29 = sshll.u32 %s1519_s18, 4  ;;  %s1406_s29 = int_to_ptr.vmem [resolvable:$false] %s1405_s29 }
 0x1da   : > { %p1404_p3 = pneg %p1403_p13  ;;  %s1407_s3 = scalar_lea.vmem %s1406_s29, 3072 }
 0x1db   : > { %p1408_p7 = scmp.lt.s32.totalorder %s1885_s25, %s1406_s29  ;;  %p1409_p1 = scmp.lt.s32.totalorder %s1407_s3, %s1401_s11 }
 0x1dd   : > { %p1410_p2 = por %p1409_p1, %p1408_p7 }
 0x1df   : > { %p1411_p4 = pnand %p1410_p2, %p1404_p3 }
 0x27d   : > { %v670_v7 = vpop.f32.mrb[0].mxu0 }
 0x27e   : > { %v671_v8 = vadd.f32 %v670_v7, %v1840_v4  ;;  %v672_v9 = vpop.f32.mrb[1].mxu0 }
 0x27f   : > { %v673_v11 = vadd.f32 %v672_v9, %v1842_v6  ;;  %v674_v12 = vpop.f32.mrb[2].mxu0 }
 0x280   : > { %v675_v13 = vadd.f32 %v674_v12, %v1840_v4  ;;  %v676_v14 = vpop.f32.mrb[3].mxu0 }
 0x281   : > { %v1109_v15 = vpack.c.bf16 %v673_v11, %v671_v8  ;;  %v677_v18 = vadd.f32 %v676_v14, %v1842_v6  ;;  %v1155_v19 = vpop.f32.mrb[0].mxu1 }
 0x282   : > { %v752_v20 = vadd.f32 %v1155_v19, %v504_v10  ;;  %v743_v21 = vpop.f32.mrb[1].mxu1 }
 0x283   : > { %854 = vst [vmem:[%s1849_s15] sm:$0xff] %v1109_v15  ;;  %v1111_v22 = vpack.c.bf16 %v677_v18, %v675_v13  ;;  %v744_v25 = vadd.f32 %v743_v21, %v504_v10  ;;  %v1156_v26 = vpop.f32.mrb[2].mxu1 }
 0x284   : > { %v1114_v27 = vpack.c.bf16 %v752_v20, %v752_v20  ;;  %v755_v28 = vadd.f32 %v1156_v26, %v504_v10  ;;  %v746_v29 = vpop.f32.mrb[3].mxu1 }
 0x285   : > { %856 = vst [vmem:[%s1849_s15 + $0xc] sm:$0xff] %v1111_v22  ;;  %v1110_v30 = vpack.c.bf16 %v744_v25, %v744_v25  ;;  %v747_v33 = vadd.f32 %v746_v29, %v504_v10  ;;  %v680_v34 = vpop.f32.mrb[4].mxu0 }
 0x286   : > { %859 = vst [vmem:[%s1849_s15 + $0x20] sm:$0xf] %v1114_v27  ;;  %v1116_v35 = vpack.c.bf16 %v755_v28, %v755_v28  ;;  %v681_v36 = vadd.f32 %v680_v34, %v1840_v4  ;;  %v682_v37 = vpop.f32.mrb[5].mxu0 }
 0x287   : > { %855 = vst [vmem:[%s1849_s15 + $0x8] sm:$0xf] %v1110_v30  ;;  %v1112_v38 = vpack.c.bf16 %v747_v33, %v747_v33  ;;  %v683_v41 = vadd.f32 %v682_v37, %v1842_v6  ;;  %v684_v42 = vpop.f32.mrb[6].mxu0 }
 0x288   : > { %861 = vst [vmem:[%s1849_s15 + $0x2c] sm:$0xf] %v1116_v35  ;;  %v685_v43 = vadd.f32 %v684_v42, %v1840_v4  ;;  %v686_v16 = vpop.f32.mrb[7].mxu0 }
 0x289   : > { %857 = vst [vmem:[%s1849_s15 + $0x14] sm:$0xf] %v1112_v38  ;;  %v1113_v44 = vpack.c.bf16 %v683_v41, %v681_v36  ;;  %v687_v45 = vadd.f32 %v686_v16, %v1842_v6  ;;  %v1159_v46 = vpop.f32.mrb[4].mxu1 }
 0x28a   : > { %v768_v47 = vadd.f32 %v1159_v46, %v504_v10  ;;  %v759_v48 = vpop.f32.mrb[5].mxu1 }
 0x28b   : > { %858 = vst [vmem:[%s1849_s15 + $0x18] sm:$0xff] %v1113_v44  ;;  %v1115_v23 = vpack.c.bf16 %v687_v45, %v685_v43  ;;  %v760_v17 = vadd.f32 %v759_v48, %v504_v10  ;;  %v1160_v49 = vpop.f32.mrb[6].mxu1 }
 0x28c   : > { %v1122_v50 = vpack.c.bf16 %v768_v47, %v768_v47  ;;  %v771_v51 = vadd.f32 %v1160_v49, %v504_v10  ;;  %v762_v52 = vpop.f32.mrb[7].mxu1 }
 0x28d   : > { %860 = vst [vmem:[%s1849_s15 + $0x24] sm:$0xff] %v1115_v23  ;;  %v1118_v53 = vpack.c.bf16 %v760_v17, %v760_v17  ;;  %v763_v54 = vadd.f32 %v762_v52, %v504_v10  ;;  %v690_v24 = vpop.f32.mrb[8].mxu0 }
 0x28e   : > { %867 = vst [vmem:[%s1849_s15 + $0x50] sm:$0xf] %v1122_v50  ;;  %v1124_v31 = vpack.c.bf16 %v771_v51, %v771_v51  ;;  %v691_v55 = vadd.f32 %v690_v24, %v1840_v4  ;;  %v692_v56 = vpop.f32.mrb[9].mxu0 }
 0x28f   : > { %863 = vst [vmem:[%s1849_s15 + $0x38] sm:$0xf] %v1118_v53  ;;  %v1120_v57 = vpack.c.bf16 %v763_v54, %v763_v54  ;;  %v693_v58 = vadd.f32 %v692_v56, %v1842_v6  ;;  %v694_v59 = vpop.f32.mrb[10].mxu0 }
 0x290   : > { %869 = vst [vmem:[%s1849_s15 + $0x5c] sm:$0xf] %v1124_v31  ;;  %v695_v60 = vadd.f32 %v694_v59, %v1840_v4  ;;  %v696_v61 = vpop.f32.mrb[11].mxu0 }
 0x291   : > { %865 = vst [vmem:[%s1849_s15 + $0x44] sm:$0xf] %v1120_v57  ;;  %v1117_v32 = vpack.c.bf16 %v693_v58, %v691_v55  ;;  %v697_v62 = vadd.f32 %v696_v61, %v1842_v6 }
 0x293   : > { %862 = vst [vmem:[%s1849_s15 + $0x30] sm:$0xff] %v1117_v32  ;;  %v1119_v39 = vpack.c.bf16 %v697_v62, %v695_v60 }
 0x295   : > { %864 = vst [vmem:[%s1849_s15 + $0x3c] sm:$0xff] %v1119_v39  ;;  %v700_v0 = vpop.f32.mrb[12].mxu0 }
 0x296   : > { %v701_v40 = vadd.f32 %v700_v0, %v1840_v4  ;;  %v702_v63 = vpop.f32.mrb[13].mxu0 }
 0x297   : > { %v703_v1 = vadd.f32 %v702_v63, %v1842_v6  ;;  %v704_v2 = vpop.f32.mrb[14].mxu0 }
 0x298   : > { %v705_v3 = vadd.f32 %v704_v2, %v1840_v4  ;;  %v706_v5 = vpop.f32.mrb[15].mxu0 }
 0x299   : > { %v1121_v7 = vpack.c.bf16 %v703_v1, %v701_v40  ;;  %v707_v8 = vadd.f32 %v706_v5, %v1842_v6 }
 0x29b   : > { %866 = vst [vmem:[%s1849_s15 + $0x48] sm:$0xff] %v1121_v7  ;;  %v1123_v9 = vpack.c.bf16 %v707_v8, %v705_v3 }
 0x29d   : > { %868 = vst [vmem:[%s1849_s15 + $0x54] sm:$0xff] %v1123_v9 }
 0x29e   : > { %1414 = shalt.err (!%p1411_p4)
}
 0x29f   : > { %s1415_s6 = scalar_lea.hbm %s1883_s7, 1536  ;;  %s1419_s12 = scalar_lea.hbm %s1981_s4, 6144 }
 0x2a0   : > { %p1416_p5 = scmp.ne.s32.totalorder %s1883_s7, %s1415_s6  ;;  %p1420_p6 = scmp.lt.u32.totalorder %s1883_s7, %s1981_s4 }
 0x2a1   : > { %p1421_p8 = scmp.lt.u32.totalorder %s1419_s12, %s1415_s6  ;;  %p1423_p12 = scmp.lt.u32.totalorder %s1415_s6, %s1883_s7 }
 0x2a2   : > { %p1417_p9 = pnand %p1416_p5, %p1662_p11 }
 0x2a3   : > { %p1422_p10 = por %p1421_p8, %p1420_p6 }
 0x2a4   : > { %p1418_p0 = pneg %p1417_p9 }
 0x2a5   : > { %p1424_p13 = por %p1423_p12, %p1422_p10 }
 0x2a7   : > { %p1425_p3 = pnand %p1424_p13, %p1418_p0 }
 0x2a9   : > { %1428 = shalt.err (!%p1425_p3)
}
 0x2aa   : > { %s1520_s16 = smov 192   ;;  %s1521_s17 = smov 12  }
 0x2ab   : > { %1171 = dma.vmem_to_hbm [thread:$0]  (%p1662_p11), %s1885_s25, 1536, %s1883_s7, %s876_s9, %s1520_s16, %s1520_s16, %s1521_s17  }
 0x2ac PF: > { %s1982_s20 = sld [smem:[#allocation14_spill]]  ;;  %s1983_s24 = sld [smem:[#allocation16_spill]] }
 0x2ad   : > { %p1192_p7 = scmp.ge.s32.totalorder %s1507_s28, 2 }
 0x2b2   : > { %s925_s26 = sand.u32 1, %s1982_s20   ;;  %p1984_p1 = scmp.ne.s32.totalorder %s1983_s24, 0 }
 0x2b3   : > { %s926_s19 = scalar_lea.sflag [#allocation4], %s925_s26 }
 0x2b4   : > { %p1183_p2 = pnand %p1192_p7, %p1984_p1 }
 0x2b6   : > { %1470 = dma.done.wait (!%p1183_p2), %s926_s19, 1024  }
 0x2b7   : > { %1472 = vsyncadd (!%p1183_p2), %s926_s19, 4294966272  ;;  %s935_s11 = scalar_lea.sflag [#allocation9], %s925_s26 }
 0x2b8   : > { %1474 = dma.done.wait (!%p1183_p2), %s935_s11, 1536  }
 0x2b9   : > { %1476 = vsyncadd (!%p1183_p2), %s935_s11, 4294965760  ;;  %s27_s28 = sadd.s32 1, %s1507_s28   ;;  %s1985_s24 = sld [smem:[#allocation15_spill]] }
 0x2ba   : > { %p24_p4 = scmp.ge.s32.totalorder %s27_s28, 6   ;;  %s1986_s26 = sld [smem:[#allocation17_spill]] }
 0x2bb   : > { %s1987_s14 = sld [smem:[#allocation18_spill]]  ;;  %s1988_s21 = smov %s1483_s22 }
 0x2bc   : > { %s1989_s22 = smov %s1487_s23  ;;  %s1990_s23 = smov %s1679_s10 }
 0x2bd   : > { %s1991_s25 = smov %s1503_s27  ;;  %26 = sbr.rel (!%p24_p4) target bundleno = 14 (0xe), region = 106 }
 0x2c1   : > { %s1992_s27 = smov %s1987_s14 }
 0x2c4   :  { %940 = vsyncpa [#allocation3], 1 }
 0x2c5   :  { %942 = vsyncpa [#allocation3 + $0x1], 1 }
 0x2c6   :  { %943 = vsyncpa [#allocation6], 1 }
 0x2c7   :  { %944 = vsyncpa [#allocation4], 1 }
 0x2c8   :  { %946 = vsyncpa [#allocation4 + $0x1], 1 }
 0x2c9   :  { %947 = vsyncpa [#allocation9], 1 }
 0x2ca   :  { %949 = vsyncpa [#allocation9 + $0x1], 1 }

// kernel: tpu_custom_call.1
= control target key start
LH: loop header
LB: loop body
LE: loop exit
PB: predicated region body
PF: predicated region fallthrough
CT: control target
= control target key end

     0   :  { %s1941_s0 = inlined_call_operand.hbm [shape: f32[2,128,128], index: 0, kind: input, shape index: {}]   ;;  %s1942_s1 = inlined_call_operand.vmem [shape: f32[1,128], index: 1, kind: input, shape index: {}]   ;;  %s1943_s2 = inlined_call_operand.vmem [shape: f32[1,128], index: 2, kind: input, shape index: {}]   ;;  %s1944_s3 = inlined_call_operand.hbm [shape: bf16[128,384], index: 3, kind: input, shape index: {}]   ;;  %s1945_s4 = inlined_call_operand.vmem [shape: f32[1,384], index: 4, kind: input, shape index: {}]   ;;  %s1946_s5 = inlined_call_operand.hbm [shape: f32[2,128,128], index: 5, kind: output, shape index: {0}]   ;;  %s1947_s6 = inlined_call_operand.hbm [shape: bf16[2,128,384], index: 6, kind: output, shape index: {1}]  }
   0x1   :  { %1958 = sst [smem:[#allocation19_spill]] %s1944_s3 }
   0x2   :  { %1959 = sst [smem:[#allocation20_spill]] %s1945_s4 }
   0x3   :  { %1960 = sst [smem:[#allocation21_spill]] %s1947_s6 }
   0x4   :  { %12 = vsyncpa [#allocation3], 0 }
   0x5   :  { %14 = vsyncpa [#allocation3 + $0x1], 0 }
   0x6   :  { %15 = vsyncpa [#allocation6], 0 }
   0x7   :  { %16 = vsyncpa [#allocation4], 0 }
   0x8   :  { %18 = vsyncpa [#allocation4 + $0x1], 0 }
   0x9   :  { %19 = vsyncpa [#allocation9], 0 }
   0xa   :  { %21 = vsyncpa [#allocation9 + $0x1], 0  ;;  %s1557_s21 = smov 0   ;;  %s1559_s22 = smov 0  }
   0xb   :  { %s1561_s23 = smov 0   ;;  %s1563_s24 = smov 0  }
   0xc   :  { %s1565_s25 = smov 0   ;;  %s1567_s26 = smov 0  }
   0xd   :  { %s1569_s27 = smov 0   ;;  %s1571_s28 = smov 0  }
   0xe LB: > { %1961 = sst [smem:[#allocation14_spill]] %s1479_s21  ;;  %s1045_s29 = sadd.s32 4294967295, %s1507_s28   ;;  %s1507_s28 = sphi %s1571_s28, %s27_s28   ;;  %s1503_s27 = sphi %s1569_s27, %s1992_s27   ;;  %s1499_s26 = sphi %s1567_s26, %s1986_s26   ;;  %s1495_s25 = sphi %s1565_s25, %s1991_s25   ;;  %s1491_s24 = sphi %s1563_s24, %s1985_s24   ;;  %s1487_s23 = sphi %s1561_s23, %s1990_s23   ;;  %s1483_s22 = sphi %s1559_s22, %s1989_s22   ;;  %s1479_s21 = sphi %s1557_s21, %s1988_s21  }
   0xf   : > { %1962 = sst [smem:[#allocation15_spill]] %s1499_s26  ;;  %s1046_s30 = sadd.s32 4294967294, %s1507_s28  }
  0x10   : > { %p61_p0 = scmp.ne.s32.totalorder %s1483_s22, %s1479_s21  ;;  %p1601_p1 = scmp.eq.s32.totalorder %s1045_s29, 0 }
  0x11   : > { %p1605_p2 = scmp.eq.s32.totalorder %s1045_s29, 3  ;;  %p177_p3 = scmp.eq.s32.totalorder %s1046_s30, 3 }
  0x12   : > { %s1963_s7 = scalar_select %p1601_p1, 1, 0 }
  0x13   : > { %s1964_s8 = scalar_select %p1605_p2, 1, 0 }
  0x14   : > { %p1611_p4 = por %p1601_p1, %p61_p0  ;;  %p1047_p5 = scmp.ge.s32.totalorder %s1507_s28, 1 }
  0x15   : > { %p1616_p6 = por %p177_p3, %p61_p0  ;;  %p212_p7 = scmp.lt.s32.totalorder %s1507_s28, 5 }
  0x16   : > { %s1965_s9 = scalar_select %p1611_p4, 1, 0 }
  0x17   : > { %s1966_s10 = scalar_select %p1616_p6, 1, 0 }
  0x18   : > { %p1621_p8 = pnand %p1047_p5, %p212_p7  ;;  %s1509_s12 = smov [#allocation5]  }
  0x19   : > { %1967 = sst [smem:[#allocation16_spill]] %s1966_s10  ;;  %s230_s13 = sshll.u32 %s1509_s12, 4  ;;  %s231_s13 = int_to_ptr.vmem [resolvable:$true] %s230_s13 }
  0x1a   : > { %s1968_s11 = scalar_select %p1621_p8, 1, 0 }
  0x1b   : > { %p1174_p9 = pneg %p1621_p8  ;;  %s1970_s3 = sld [smem:[#allocation19_spill]] }
  0x1d   : > { %p1629_p10 = pnand %p1174_p9, %p1601_p1 }
  0x1f   : > { %p1317_p12 = pneg %p1629_p10 }
  0x21   : > { %s1315_s17 = scalar_lea.hbm %s1970_s3, 3072 }
  0x22   : > { %p1316_p11 = scmp.ne.s32.totalorder %s1970_s3, %s1315_s17  ;;  %p1322_p3 = scmp.lt.u32.totalorder %s1315_s17, %s1970_s3 }
  0x24   : > { %p1318_p13 = pnand %p1317_p12, %p1316_p11 }
  0x26   : > { %p1319_p0 = pneg %p1318_p13 }
  0x28   : > { %p1324_p5 = pnand %p1322_p3, %p1319_p0 }
  0x2a   : > { %1327 = shalt.err (!%p1324_p5)
}
  0x2b   : > { %s1328_s30 = scalar_lea.vmem %s231_s13, 3072  ;;  %p1336_p1 = scmp.lt.s32.totalorder %s231_s13, %s231_s13 }
  0x2c   : > { %p1329_p7 = scmp.ne.s32.totalorder %s231_s13, %s1328_s30  ;;  %p1337_p4 = scmp.lt.s32.totalorder %s1328_s30, %s1328_s30 }
  0x2e   : > { %p1331_p9 = pnand %p1329_p7, %p1317_p12  ;;  %p1338_p8 = por %p1337_p4, %p1336_p1 }
  0x30   : > { %p1332_p6 = pneg %p1331_p9 }
  0x32   : > { %p1339_p2 = pnand %p1338_p8, %p1332_p6 }
  0x34   : > { %1342 = shalt.err (!%p1339_p2)
}
  0x35   : > { %s1510_s12 = smov 192   ;;  %s1511_s15 = smov 12  }
  0x36   : > { %1177 = dma.hbm_to_vmem [thread:$0]  (!%p1629_p10), %s1970_s3, 3072, %s231_s13, [#allocation6], %s1510_s12, %s1510_s12, %s1511_s15  }
  0x37   : > { %s36_s18 = sadd.s32 1, %s1499_s26  ;;  %s39_s19 = sadd.s32 1, %s1503_s27 }
  0x38   : > { %p37_p1 = scmp.ge.s32.totalorder %s36_s18, 2  ;;  %s48_s20 = sadd.s32 1, %s1487_s23 }
  0x39   : > { %p55_p2 = scmp.ne.s32.totalorder %s1487_s23, %s1483_s22  ;;  %p56_p4 = scmp.eq.s32.totalorder %s1507_s28, 0 }
  0x3a   : > { %s1994_s18 = smov (%p37_p1, %s36_s18), 0  ;;  %s1996_s19 = smov (!%p37_p1, %s39_s19), %s1503_s27 }
  0x3b   : > { %1971 = sst [smem:[#allocation17_spill]] %s1994_s18  ;;  %s44_s29 = ssub.s32 %s1499_s26, %s1994_s18 }
  0x3c   : > { %p41_p6 = scmp.ge.s32.totalorder %s1996_s19, 2  ;;  %p1972_p8 = scmp.ne.s32.totalorder %s1964_s8, 0 }
  0x3d   : > { %p1666_p10 = por %p56_p4, %p55_p2  ;;  %p1190_p12 = scmp.lt.s32.totalorder %s1507_s28, 4 }
  0x3e   : > { %p1662_p11 = por %p1972_p8, %p55_p2  ;;  %s1998_s19 = smov (%p41_p6, %s1996_s19), 0 }
  0x3f   : > { %1975 = sst [smem:[#allocation18_spill]] %s1998_s19  ;;  %s247_s30 = sand.u32 1, %s1487_s23  }
  0x40   : > { %s1051_s12 = sshll.u32 %s1499_s26, 3  ;;  %s43_s15 = ssub.s32 %s1503_s27, %s1998_s19 }
  0x41   : > { %s45_s16 = sor.u32 %s44_s29, %s43_s15  ;;  %s1050_s17 = sshll.u32 %s247_s30, 6 }
  0x42   : > { %p46_p13 = scmp.eq.s32.totalorder %s45_s16, 0  ;;  %s1052_s8 = sshll.u32 %s1503_s27, 4 }
  0x43   : > { %s251_s3 = scalar_lea.vmem [#allocation2], %s1050_s17  ;;  %s257_s21 = sadd.s32 %s1052_s8, %s1051_s12 }
  0x44   : > { %s260_s18 = sshll.u32 %s251_s3, 4  ;;  %s1053_s6 = sshll.u32 %s257_s21, 7  ;;  %s1681_s18 = int_to_ptr.vmem [resolvable:$true] %s260_s18 }
  0x45   : > { %s1679_s10 = scalar_select %p46_p13, %s1487_s23, %s48_s20  }
  0x46   : > { %p1687_p0 = pnand %p1190_p12, %p1666_p10  ;;  %s1694_s29 = scalar_lea.hbm %s1941_s0, %s1053_s6 }
  0x47   : > { %s1696_s3 = scalar_lea.sflag [#allocation3], %s247_s30  ;;  %s1343_s21 = scalar_lea.hbm %s1694_s29, 1024 }
  0x48   : > { %p1344_p3 = scmp.ne.s32.totalorder %s1694_s29, %s1343_s21  ;;  %p1345_p5 = pneg %p1687_p0 }
  0x49   : > { %s1348_s19 = scalar_lea.hbm %s1941_s0, 4096  ;;  %p1349_p1 = scmp.lt.u32.totalorder %s1694_s29, %s1941_s0 }
  0x4a   : > { %p1346_p7 = pnand %p1345_p5, %p1344_p3  ;;  %p1350_p2 = scmp.lt.u32.totalorder %s1348_s19, %s1343_s21 }
  0x4b   : > { %p1352_p6 = scmp.lt.u32.totalorder %s1343_s21, %s1694_s29 }
  0x4c   : > { %p1347_p9 = pneg %p1346_p7  ;;  %p1351_p4 = por %p1350_p2, %p1349_p1 }
  0x4e   : > { %p1353_p8 = por %p1352_p6, %p1351_p4 }
  0x50   : > { %p1354_p10 = pnand %p1353_p8, %p1347_p9 }
  0x52   : > { %1357 = shalt.err (!%p1354_p10)
}
  0x53   : > { %s1358_s30 = scalar_lea.vmem %s1681_s18, 1024  ;;  %s1512_s12 = smov [#allocation2]  }
  0x54   : > { %p1359_p12 = scmp.ne.s32.totalorder %s1681_s18, %s1358_s30  ;;  %s1363_s15 = sshll.u32 %s1512_s12, 4  ;;  %s1364_s15 = int_to_ptr.vmem [resolvable:$false] %s1363_s15 }
  0x55   : > { %s1365_s16 = scalar_lea.vmem %s1364_s15, 2048  ;;  %p1366_p7 = scmp.lt.s32.totalorder %s1681_s18, %s1364_s15 }
  0x56   : > { %p1361_p13 = pnand %p1359_p12, %p1345_p5  ;;  %p1367_p1 = scmp.lt.s32.totalorder %s1365_s16, %s1358_s30 }
  0x58   : > { %p1362_p3 = pneg %p1361_p13  ;;  %p1368_p2 = por %p1367_p1, %p1366_p7 }
  0x5a   : > { %p1369_p4 = pnand %p1368_p2, %p1362_p3 }
  0x5c   : > { %1372 = shalt.err (!%p1369_p4)
}
  0x5d   : > { %s1513_s17 = smov 128   ;;  %s1514_s8 = smov 8  }
  0x5e   : > { %1181 = dma.hbm_to_vmem [thread:$0]  (!%p1687_p0), %s1694_s29, 1024, %s1681_s18, %s1696_s3, %s1513_s17, %s1513_s17, %s1514_s8  }
  0x5f   : > { %p1977_p5 = scmp.ne.s32.totalorder %s1968_s11, 0 }
  0x60   : > { %s1727_s21 = sand.u32 (!%p1977_p5), 1, %s1483_s22   ;;  %p1978_p9 = scmp.ne.s32.totalorder (!%p1977_p5), %s1965_s9, 0 }
  0x61   : > { %272 = sbr.rel (%p1977_p5) target bundleno = 684 (0x2ac), region = 40  ;;  %s1055_s20 = sshll.u32 (!%p1977_p5), %s1727_s21, 6 }
  0x62   : > { %s275_s26 = scalar_lea.sflag (!%p1977_p5), [#allocation3], %s1727_s21  ;;  %s278_s19 = scalar_lea.vmem (!%p1977_p5), [#allocation2], %s1055_s20 }
  0x68   : > { %1462 = dma.done.wait (%p1978_p9), %s275_s26, 1024  }
  0x69   : > { %1464 = vsyncadd (%p1978_p9), %s275_s26, 4294966272  ;;  %p1979_p0 = scmp.ne.s32.totalorder %s1963_s7, 0 }
  0x6b   : > { %1466 = dma.done.wait (%p1979_p0), [#allocation6], 3072  }
  0x6c   : > { %1468 = vsyncadd (%p1979_p0), [#allocation6], 4294964224  ;;  %v320_v0 = vld [vmem:[%s278_s19] sm:$0xff]  ;;  %v322_v1 = vld [vmem:[%s278_s19 + $0x10] sm:$0xff]  ;;  %v1515_v63 = vmov 0   ;;  %s1785_s18 = scalar_lea.vmem [#allocation7], %s1055_s20 }
  0x6d   : > { %328 = vadd.xlane.f32.xlu0 %v320_v0  ;;  %332 = vadd.xlane.f32.xlu1 %v322_v1  ;;  %v321_v2 = vld [vmem:[%s278_s19 + $0x8] sm:$0xff]  ;;  %v323_v3 = vld [vmem:[%s278_s19 + $0x18] sm:$0xff]  ;;  %v324_v4 = vld [vmem:[%s278_s19 + $0x20] sm:$0xff]  ;;  %s1101_s29 = sshll.u32 %s1491_s24, 3  ;;  %s1102_s3 = sshll.u32 %s1495_s25, 4 }
  0x6e   : > { %v325_v5 = vld [vmem:[%s278_s19 + $0x28] sm:$0xff]  ;;  %v326_v6 = vld [vmem:[%s278_s19 + $0x30] sm:$0xff]  ;;  %v327_v7 = vld [vmem:[%s278_s19 + $0x38] sm:$0xff]  ;;  %668 = vmatprep.mubr.bf16.mxu0 %v1515_v63  ;;  %s888_s6 = sadd.s32 %s1102_s3, %s1101_s29  ;;  %s891_s16 = sshll.u32 %s1785_s18, 4  ;;  %s1811_s16 = int_to_ptr.vmem [resolvable:$true] %s891_s16 }
  0x6f   : > { %v1267_v8 = vld [vmem:[#allocation5 + $0x4] ss:$12 sps:$4 sm:$0xff]   ;;  %v1269_v9 = vld [vmem:[#allocation5] ss:$12 sps:$4 sm:$0xff]   ;;  %v1270_v10 = vld [vmem:[#allocation5 + $0x1c] ss:$12 sps:$4 sm:$0xff]  }
  0x70   : > { %v1272_v11 = vld [vmem:[#allocation5 + $0x8] ss:$12 sps:$4 sm:$0xff]   ;;  %636 = vmatprep.subr.bf16.mxu0 %v1267_v8  ;;  %v1273_v44 = vld [vmem:[#allocation5 + $0x18] ss:$12 sps:$4 sm:$0xff]   ;;  %v1276_v46 = vld [vmem:[#allocation5 + $0x20] ss:$12 sps:$4 sm:$0xff]  }
  0x71   : > { %330 = vadd.xlane.f32.xlu0 %v321_v2  ;;  %334 = vadd.xlane.f32.xlu1 %v323_v3  ;;  %v1274_v45 = vld [vmem:[#allocation5 + $0x34] ss:$12 sps:$4 sm:$0xff]   ;;  %v1277_v47 = vld [vmem:[#allocation5 + $0x30] ss:$12 sps:$4 sm:$0xff]   ;;  %v1278_v48 = vld [vmem:[#allocation5 + $0x4c] ss:$12 sps:$4 sm:$0xff]  }
  0x72   : > { %637 = vmatpush1.bf16.msra.mxu0 %v1269_v9  ;;  %1137 = vmatprep.subr.bf16.mxu1 %v1272_v11  ;;  %v1280_v49 = vld [vmem:[#allocation5 + $0x38] ss:$12 sps:$4 sm:$0xff]   ;;  %v1281_v50 = vld [vmem:[#allocation5 + $0x48] ss:$12 sps:$4 sm:$0xff]   ;;  %v1284_v52 = vld [vmem:[#allocation5 + $0x50] ss:$12 sps:$4 sm:$0xff]  }
  0x73   : > { %638 = vmatprep.subr.bf16.mxu0 %v1270_v10  ;;  %1138 = vmatpush3.bf16.msra.mxu1 %v1272_v11  ;;  %v1282_v51 = vld [vmem:[#allocation5 + $0x64] ss:$12 sps:$4 sm:$0xff]   ;;  %v1285_v53 = vld [vmem:[#allocation5 + $0x60] ss:$12 sps:$4 sm:$0xff]   ;;  %v1286_v54 = vld [vmem:[#allocation5 + $0x7c] ss:$12 sps:$4 sm:$0xff]  }
  0x74   : > { %1139 = vmatprep.subr.bf16.mxu1 %v1276_v46  ;;  %v1288_v55 = vld [vmem:[#allocation5 + $0x68] ss:$12 sps:$4 sm:$0xff]   ;;  %v1289_v56 = vld [vmem:[#allocation5 + $0x78] ss:$12 sps:$4 sm:$0xff]   ;;  %v1292_v58 = vld [vmem:[#allocation5 + $0x80] ss:$12 sps:$4 sm:$0xff]  }
  0x75   : > { %336 = vadd.xlane.f32.xlu0 %v324_v4  ;;  %338 = vadd.xlane.f32.xlu1 %v325_v5  ;;  %v1290_v57 = vld [vmem:[#allocation5 + $0x94] ss:$12 sps:$4 sm:$0xff]   ;;  %v1293_v59 = vld [vmem:[#allocation5 + $0x90] ss:$12 sps:$4 sm:$0xff]   ;;  %v1294_v60 = vld [vmem:[#allocation5 + $0xac] ss:$12 sps:$4 sm:$0xff]  }
  0x76   : > { %639 = vmatpush1.bf16.msra.mxu0 %v1273_v44  ;;  %v1296_v61 = vld [vmem:[#allocation5 + $0x98] ss:$12 sps:$4 sm:$0xff]   ;;  %v1297_v62 = vld [vmem:[#allocation5 + $0xa8] ss:$12 sps:$4 sm:$0xff]   ;;  %s1103_s13 = sshll.u32 %s888_s6, 7  ;;  %s871_s17 = scalar_lea.sflag [#allocation4], %s1727_s21 }
  0x77   : > { %640 = vmatprep.subr.bf16.mxu0 %v1274_v45  ;;  %1140 = vmatpush3.bf16.msra.mxu1 %v1276_v46  ;;  %s1808_s15 = scalar_lea.hbm %s1946_s5, %s1103_s13  ;;  %s1373_s8 = scalar_lea.vmem %s1811_s16, 1024 }
  0x78   : > { %1141 = vmatprep.subr.bf16.mxu1 %v1280_v49  ;;  %p1374_p6 = scmp.ne.s32.totalorder %s1811_s16, %s1373_s8  ;;  %s1516_s20 = smov [#allocation7]  }
  0x79   : > { %340 = vadd.xlane.f32.xlu0 %v326_v6  ;;  %342 = vadd.xlane.f32.xlu1 %v327_v7  ;;  %s1377_s26 = sshll.u32 %s1516_s20, 4  ;;  %s1378_s26 = int_to_ptr.vmem [resolvable:$false] %s1377_s26 }
  0x7a   : > { %641 = vmatpush1.bf16.msra.mxu0 %v1277_v47  ;;  %p1375_p8 = pnand %p1374_p6, %p1662_p11  ;;  %s1379_s19 = scalar_lea.vmem %s1378_s26, 2048 }
  0x7b   : > { %642 = vmatprep.subr.bf16.mxu0 %v1278_v48  ;;  %1142 = vmatpush3.bf16.msra.mxu1 %v1280_v49  ;;  %p1380_p12 = scmp.lt.s32.totalorder %s1811_s16, %s1378_s26  ;;  %p1381_p13 = scmp.lt.s32.totalorder %s1379_s19, %s1373_s8 }
  0x7c   : > { %1143 = vmatprep.subr.bf16.mxu1 %v1284_v52  ;;  %p1376_p10 = pneg %p1375_p8 }
  0x7d   : > { %p1382_p3 = por %p1381_p13, %p1380_p12 }
  0x7e   : > { %643 = vmatpush1.bf16.msra.mxu0 %v1281_v50 }
  0x7f   : > { %644 = vmatprep.subr.bf16.mxu0 %v1282_v51  ;;  %1144 = vmatpush3.bf16.msra.mxu1 %v1284_v52  ;;  %p1383_p7 = pnand %p1382_p3, %p1376_p10 }
  0x80   : > { %1145 = vmatprep.subr.bf16.mxu1 %v1288_v55 }
  0x82   : > { %645 = vmatpush1.bf16.msra.mxu0 %v1285_v53 }
  0x83   : > { %646 = vmatprep.subr.bf16.mxu0 %v1286_v54  ;;  %1146 = vmatpush3.bf16.msra.mxu1 %v1288_v55 }
  0x84   : > { %1147 = vmatprep.subr.bf16.mxu1 %v1292_v58 }
  0x86   : > { %647 = vmatpush1.bf16.msra.mxu0 %v1289_v56 }
  0x87   : > { %648 = vmatprep.subr.bf16.mxu0 %v1290_v57  ;;  %1148 = vmatpush3.bf16.msra.mxu1 %v1292_v58 }
  0x88   : > { %1149 = vmatprep.subr.bf16.mxu1 %v1296_v61 }
  0x8a   : > { %649 = vmatpush1.bf16.msra.mxu0 %v1293_v59 }
  0x8b   : > { %650 = vmatprep.subr.bf16.mxu0 %v1294_v60  ;;  %1150 = vmatpush3.bf16.msra.mxu1 %v1296_v61 }
  0x8e   : > { %651 = vmatpush1.bf16.msra.mxu0 %v1297_v62 }
  0xfa   : > { %v329_v12 = vpop.xlane.xlu0 %328  ;;  %v333_v13 = vpop.xlane.xlu1 %332 }
  0xfb   : > { %v345_v14 = vmul.f32 0.0078125, %v329_v12  ;;  %v347_v15 = vmul.f32 0.0078125, %v333_v13 }
  0xfd   : > { %v1741_v16 = vsub.f32 %v320_v0, %v345_v14  ;;  %v1743_v17 = vsub.f32 %v322_v1, %v347_v15  ;;  %v1298_v0 = vld [vmem:[#allocation5 + $0xb0] ss:$12 sps:$4 sm:$0xff]  }
  0xfe   : > { %v331_v18 = vpop.xlane.xlu0 %330  ;;  %v335_v19 = vpop.xlane.xlu1 %334  ;;  %1151 = vmatprep.subr.bf16.mxu1 %v1298_v0 }
  0xff   : > { %v346_v20 = vmul.f32 0.0078125, %v331_v18  ;;  %v361_v21 = vmul.f32 %v1741_v16, %v1741_v16  ;;  %v348_v22 = vmul.f32 0.0078125, %v335_v19  ;;  %v363_v25 = vmul.f32 %v1743_v17, %v1743_v17  ;;  %1152 = vmatpush3.bf16.msra.mxu1 %v1298_v0 }
 0x101   : > { %v1747_v23 = vsub.f32 %v321_v2, %v346_v20  ;;  %369 = vadd.xlane.f32.xlu0 %v361_v21  ;;  %v1749_v24 = vsub.f32 %v323_v3, %v348_v22 }
 0x102   : > { %v337_v26 = vpop.xlane.xlu0 %336  ;;  %v339_v27 = vpop.xlane.xlu1 %338 }
 0x103   : > { %v349_v28 = vmul.f32 0.0078125, %v337_v26  ;;  %v362_v29 = vmul.f32 %v1747_v23, %v1747_v23  ;;  %v350_v30 = vmul.f32 0.0078125, %v339_v27  ;;  %v364_v33 = vmul.f32 %v1749_v24, %v1749_v24  ;;  %v1058_v27 = vld [vmem:[%s1942_s1] ss:$0 sm:$0xff] }
 0x105   : > { %v1755_v31 = vsub.f32 %v324_v4, %v349_v28  ;;  %373 = vadd.xlane.f32.xlu0 %v363_v25  ;;  %371 = vadd.xlane.f32.xlu1 %v362_v29  ;;  %v1757_v32 = vsub.f32 %v325_v5, %v350_v30 }
 0x106   : > { %v341_v34 = vpop.xlane.xlu0 %340  ;;  %v343_v35 = vpop.xlane.xlu1 %342 }
 0x107   : > { %v351_v36 = vmul.f32 0.0078125, %v341_v34  ;;  %v365_v37 = vmul.f32 %v1755_v31, %v1755_v31  ;;  %v352_v38 = vmul.f32 0.0078125, %v343_v35  ;;  %v366_v41 = vmul.f32 %v1757_v32, %v1757_v32 }
 0x109   : > { %v1763_v39 = vsub.f32 %v326_v6, %v351_v36  ;;  %375 = vadd.xlane.f32.xlu1 %v364_v33  ;;  %377 = vadd.xlane.f32.xlu0 %v365_v37  ;;  %v1765_v40 = vsub.f32 %v327_v7, %v352_v38  ;;  %v1059_v33 = vld [vmem:[%s1943_s2] ss:$0 sm:$0xff] }
 0x10b   : > { %v367_v42 = vmul.f32 %v1763_v39, %v1763_v39  ;;  %v368_v43 = vmul.f32 %v1765_v40, %v1765_v40 }
 0x10d   : > { %379 = vadd.xlane.f32.xlu1 %v366_v41  ;;  %381 = vadd.xlane.f32.xlu0 %v367_v42 }
 0x111   : > { %383 = vadd.xlane.f32.xlu1 %v368_v43 }
 0x18e   : > { %v370_v1 = vpop.xlane.xlu0 %369 }
 0x18f   : > { %v385_v2 = vmul.f32 0.0078125, %v370_v1 }
 0x191   : > { %v393_v3 = vadd.f32 1e-05, %v385_v2 }
 0x192   : > { %v372_v4 = vpop.xlane.xlu1 %371  ;;  %v374_v5 = vpop.xlane.xlu0 %373 }
 0x193   : > { %1299 = vrsqrt.f32 %v393_v3  ;;  %v386_v6 = vmul.f32 0.0078125, %v372_v4  ;;  %v387_v7 = vmul.f32 0.0078125, %v374_v5 }
 0x195   : > { %v394_v8 = vadd.f32 1e-05, %v386_v6  ;;  %v395_v9 = vadd.f32 1e-05, %v387_v7 }
 0x196   : > { %v376_v10 = vpop.xlane.xlu1 %375  ;;  %v378_v11 = vpop.xlane.xlu0 %377 }
 0x197   : > { %1301 = vrsqrt.f32 %v394_v8  ;;  %v388_v12 = vmul.f32 0.0078125, %v376_v10  ;;  %v389_v13 = vmul.f32 0.0078125, %v378_v11 }
 0x198   : > { %1303 = vrsqrt.f32 %v395_v9 }
 0x199   : > { %v396_v14 = vadd.f32 1e-05, %v388_v12  ;;  %v397_v15 = vadd.f32 1e-05, %v389_v13 }
 0x19a   : > { %v380_v18 = vpop.xlane.xlu1 %379  ;;  %v382_v19 = vpop.xlane.xlu0 %381 }
 0x19b   : > { %1305 = vrsqrt.f32 %v396_v14  ;;  %v390_v20 = vmul.f32 0.0078125, %v380_v18  ;;  %v391_v21 = vmul.f32 0.0078125, %v382_v19 }
 0x19c   : > { %1307 = vrsqrt.f32 %v397_v15 }
 0x19d   : > { %v1300_v22 = vpop.eup %1299  ;;  %v398_v25 = vadd.f32 1e-05, %v390_v20  ;;  %v399_v26 = vadd.f32 1e-05, %v391_v21 }
 0x19e   : > { %v384_v28 = vpop.xlane.xlu1 %383  ;;  %v409_v29 = vmul.f32 %v1300_v22, %v1741_v16 }
 0x19f   : > { %1309 = vrsqrt.f32 %v398_v25  ;;  %v392_v30 = vmul.f32 0.0078125, %v384_v28 }
 0x1a0   : > { %1311 = vrsqrt.f32 %v399_v26  ;;  %v424_v34 = vmul.f32 %v1058_v27, %v409_v29 }
 0x1a1   : > { %v1302_v35 = vpop.eup %1301  ;;  %v400_v36 = vadd.f32 1e-05, %v392_v30 }
 0x1a2   : > { %v1304_v37 = vpop.eup %1303  ;;  %v410_v38 = vmul.f32 %v1302_v35, %v1747_v23  ;;  %v439_v41 = vadd.f32 %v1059_v33, %v424_v34 }
 0x1a3   : > { %1313 = vrsqrt.f32 %v400_v36  ;;  %v411_v42 = vmul.f32 %v1304_v37, %v1743_v17 }
 0x1a4   : > { %v425_v43 = vmul.f32 %v1058_v27, %v410_v38  ;;  %447 = vst [vmem:[%s1785_s18] sm:$0xff] %v439_v41 }
 0x1a5   : > { %v1306_v16 = vpop.eup %1305  ;;  %v426_v44 = vmul.f32 %v1058_v27, %v411_v42 }
 0x1a6   : > { %v1308_v45 = vpop.eup %1307  ;;  %v440_v46 = vadd.f32 %v1059_v33, %v425_v43  ;;  %v412_v47 = vmul.f32 %v1306_v16, %v1749_v24 }
 0x1a7   : > { %v441_v48 = vadd.f32 %v1059_v33, %v426_v44  ;;  %v413_v23 = vmul.f32 %v1308_v45, %v1755_v31 }
 0x1a8   : > { %448 = vst [vmem:[%s1785_s18 + $0x8] sm:$0xff] %v440_v46  ;;  %v455_v17 = vpack.c.bf16 %v440_v46, %v439_v41  ;;  %v427_v49 = vmul.f32 %v1058_v27, %v412_v47 }
 0x1a9   : > { %v1310_v50 = vpop.eup %1309  ;;  %449 = vst [vmem:[%s1785_s18 + $0x10] sm:$0xff] %v441_v48  ;;  %v428_v51 = vmul.f32 %v1058_v27, %v413_v23 }
 0x1aa   : > { %v1312_v52 = vpop.eup %1311  ;;  %669 = vmatmul.mubr.bf16.vlgmr.msra.gmra.mrb[0].mxu0 %v455_v17  ;;  %1153 = vmatprep.mubr.bf16.mxu1 %v455_v17  ;;  %v442_v53 = vadd.f32 %v1059_v33, %v427_v49  ;;  %v414_v54 = vmul.f32 %v1310_v50, %v1757_v32 }
 0x1ab   : > { %678 = vmatprep.mubr.bf16.mxu0 %v1515_v63  ;;  %v443_v24 = vadd.f32 %v1059_v33, %v428_v51  ;;  %v415_v31 = vmul.f32 %v1312_v52, %v1763_v39 }
 0x1ac   : > { %450 = vst [vmem:[%s1785_s18 + $0x18] sm:$0xff] %v442_v53  ;;  %v456_v55 = vpack.c.bf16 %v442_v53, %v441_v48  ;;  %v429_v56 = vmul.f32 %v1058_v27, %v414_v54 }
 0x1ad   : > { %v1314_v57 = vpop.eup %1313  ;;  %451 = vst [vmem:[%s1785_s18 + $0x20] sm:$0xff] %v443_v24  ;;  %v430_v58 = vmul.f32 %v1058_v27, %v415_v31 }
 0x1ae   : > { %1154 = vmatmul.mubr.bf16.vlgmr.msra.gmra.mrb[0].mxu1 %v456_v55  ;;  %v444_v59 = vadd.f32 %v1059_v33, %v429_v56  ;;  %v416_v60 = vmul.f32 %v1314_v57, %v1765_v40 }
 0x1af   : > { %v445_v61 = vadd.f32 %v1059_v33, %v430_v58 }
 0x1b0   : > { %452 = vst [vmem:[%s1785_s18 + $0x28] sm:$0xff] %v444_v59  ;;  %v457_v32 = vpack.c.bf16 %v444_v59, %v443_v24  ;;  %v431_v62 = vmul.f32 %v1058_v27, %v416_v60 }
 0x1b1   : > { %453 = vst [vmem:[%s1785_s18 + $0x30] sm:$0xff] %v445_v61 }
 0x1b2   : > { %679 = vmatmul.mubr.bf16.gmra.mrb[4].mxu0 %v456_v55  ;;  %1157 = vmatprep.mubr.bf16.mxu1 %v457_v32  ;;  %v446_v39 = vadd.f32 %v1059_v33, %v431_v62 }
 0x1b3   : > { %688 = vmatprep.mubr.bf16.mxu0 %v1515_v63 }
 0x1b4   : > { %454 = vst [vmem:[%s1785_s18 + $0x38] sm:$0xff] %v446_v39  ;;  %v458_v0 = vpack.c.bf16 %v446_v39, %v445_v61 }
 0x1b6   : > { %1158 = vmatmul.mubr.bf16.gmra.mrb[4].mxu1 %v458_v0 }
 0x1ba   : > { %689 = vmatmul.mubr.bf16.gmra.mrb[8].mxu0 %v457_v32 }
 0x1bb   : > { %698 = vmatprep.mubr.bf16.mxu0 %v1515_v63 }
 0x1c2   : > { %699 = vmatmul.mubr.bf16.gmra.mrb[12].mxu0 %v458_v0 }
 0x1c3   : > { %1386 = shalt.err (!%p1383_p7)
}
 0x1c4   : > { %s1387_s4 = scalar_lea.hbm %s1808_s15, 1024  ;;  %s1391_s11 = scalar_lea.hbm %s1946_s5, 4096 }
 0x1c5   : > { %p1388_p1 = scmp.ne.s32.totalorder %s1808_s15, %s1387_s4  ;;  %p1392_p5 = scmp.lt.u32.totalorder %s1808_s15, %s1946_s5 }
 0x1c6   : > { %p1393_p9 = scmp.lt.u32.totalorder %s1391_s11, %s1387_s4  ;;  %p1395_p6 = scmp.lt.u32.totalorder %s1387_s4, %s1808_s15 }
 0x1c7   : > { %p1389_p2 = pnand %p1388_p1, %p1662_p11 }
 0x1c8   : > { %p1394_p0 = por %p1393_p9, %p1392_p5 }
 0x1c9   : > { %p1390_p4 = pneg %p1389_p2 }
 0x1ca   : > { %p1396_p8 = por %p1395_p6, %p1394_p0 }
 0x1cc   : > { %p1397_p10 = pnand %p1396_p8, %p1390_p4 }
 0x1ce   : > { %1400 = shalt.err (!%p1397_p10)
}
 0x1cf   : > { %s1517_s3 = smov 128   ;;  %s1518_s6 = smov 8   ;;  %v493_v40 = vlaneseq }
 0x1d0   : > { %1170 = dma.vmem_to_hbm [thread:$0]  (%p1662_p11), %s1811_s16, 1024, %s1808_s15, %s871_s17, %s1517_s3, %s1517_s3, %s1518_s6  }
 0x1d1   : > { %v494_v63 = vshrl.u32 %v493_v40, 7  ;;  %s1980_s12 = sld [smem:[#allocation20_spill]]  ;;  %s1161_s8 = smul.u32 96, %s1727_s21 }
 0x1d2   : > { %s1162_s16 = smul.u32 24, %s1491_s24  ;;  %s1981_s4 = sld [smem:[#allocation21_spill]] }
 0x1d3   : > { %v495_v1 = vsub.s32 0, %v494_v63  ;;  %v499_v3 = vsub.s32 1, %v494_v63  ;;  %v503_v5 = vsub.s32 2, %v494_v63  ;;  %s1849_s15 = scalar_lea.vmem [#allocation8], %s1161_s8  ;;  %s1163_s17 = smul.u32 48, %s1495_s25 }
 0x1d4   : > { %s910_s25 = sshll.u32 %s1849_s15, 4  ;;  %s876_s9 = scalar_lea.sflag [#allocation9], %s1727_s21  ;;  %s1885_s25 = int_to_ptr.vmem [resolvable:$true] %s910_s25 }
 0x1d5   : > { %s907_s20 = sadd.s32 %s1163_s17, %s1162_s16  ;;  %s1401_s11 = scalar_lea.vmem %s1885_s25, 1536 }
 0x1d6   : > { %s1106_s24 = sshll.u32 %s907_s20, 6  ;;  %p1402_p12 = scmp.ne.s32.totalorder %s1885_s25, %s1401_s11 }
 0x1d7   : > { %v491_v2 = vld [vmem:[%s1980_s12] sm:$0x7]  ;;  %s1519_s18 = smov [#allocation8]  }
 0x1d8   : > { %v1840_v4 = vrot.slane %v491_v2, %v495_v1  ;;  %v1842_v6 = vrot.slane %v491_v2, %v499_v3  ;;  %v504_v10 = vrot.slane %v491_v2, %v503_v5  ;;  %s1883_s7 = scalar_lea.hbm %s1981_s4, %s1106_s24  ;;  %p1403_p13 = pnand %p1402_p12, %p1662_p11 }
 0x1d9   : > { %s1405_s29 = sshll.u32 %s1519_s18, 4  ;;  %s1406_s29 = int_to_ptr.vmem [resolvable:$false] %s1405_s29 }
 0x1da   : > { %p1404_p3 = pneg %p1403_p13  ;;  %s1407_s3 = scalar_lea.vmem %s1406_s29, 3072 }
 0x1db   : > { %p1408_p7 = scmp.lt.s32.totalorder %s1885_s25, %s1406_s29  ;;  %p1409_p1 = scmp.lt.s32.totalorder %s1407_s3, %s1401_s11 }
 0x1dd   : > { %p1410_p2 = por %p1409_p1, %p1408_p7 }
 0x1df   : > { %p1411_p4 = pnand %p1410_p2, %p1404_p3 }
 0x27d   : > { %v670_v7 = vpop.f32.mrb[0].mxu0 }
 0x27e   : > { %v671_v8 = vadd.f32 %v670_v7, %v1840_v4  ;;  %v672_v9 = vpop.f32.mrb[1].mxu0 }
 0x27f   : > { %v673_v11 = vadd.f32 %v672_v9, %v1842_v6  ;;  %v674_v12 = vpop.f32.mrb[2].mxu0 }
 0x280   : > { %v675_v13 = vadd.f32 %v674_v12, %v1840_v4  ;;  %v676_v14 = vpop.f32.mrb[3].mxu0 }
 0x281   : > { %v1109_v15 = vpack.c.bf16 %v673_v11, %v671_v8  ;;  %v677_v18 = vadd.f32 %v676_v14, %v1842_v6  ;;  %v1155_v19 = vpop.f32.mrb[0].mxu1 }
 0x282   : > { %v752_v20 = vadd.f32 %v1155_v19, %v504_v10  ;;  %v743_v21 = vpop.f32.mrb[1].mxu1 }
 0x283   : > { %854 = vst [vmem:[%s1849_s15] sm:$0xff] %v1109_v15  ;;  %v1111_v22 = vpack.c.bf16 %v677_v18, %v675_v13  ;;  %v744_v25 = vadd.f32 %v743_v21, %v504_v10  ;;  %v1156_v26 = vpop.f32.mrb[2].mxu1 }
 0x284   : > { %v1114_v27 = vpack.c.bf16 %v752_v20, %v752_v20  ;;  %v755_v28 = vadd.f32 %v1156_v26, %v504_v10  ;;  %v746_v29 = vpop.f32.mrb[3].mxu1 }
 0x285   : > { %856 = vst [vmem:[%s1849_s15 + $0xc] sm:$0xff] %v1111_v22  ;;  %v1110_v30 = vpack.c.bf16 %v744_v25, %v744_v25  ;;  %v747_v33 = vadd.f32 %v746_v29, %v504_v10  ;;  %v680_v34 = vpop.f32.mrb[4].mxu0 }
 0x286   : > { %859 = vst [vmem:[%s1849_s15 + $0x20] sm:$0xf] %v1114_v27  ;;  %v1116_v35 = vpack.c.bf16 %v755_v28, %v755_v28  ;;  %v681_v36 = vadd.f32 %v680_v34, %v1840_v4  ;;  %v682_v37 = vpop.f32.mrb[5].mxu0 }
 0x287   : > { %855 = vst [vmem:[%s1849_s15 + $0x8] sm:$0xf] %v1110_v30  ;;  %v1112_v38 = vpack.c.bf16 %v747_v33, %v747_v33  ;;  %v683_v41 = vadd.f32 %v682_v37, %v1842_v6  ;;  %v684_v42 = vpop.f32.mrb[6].mxu0 }
 0x288   : > { %861 = vst [vmem:[%s1849_s15 + $0x2c] sm:$0xf] %v1116_v35  ;;  %v685_v43 = vadd.f32 %v684_v42, %v1840_v4  ;;  %v686_v16 = vpop.f32.mrb[7].mxu0 }
 0x289   : > { %857 = vst [vmem:[%s1849_s15 + $0x14] sm:$0xf] %v1112_v38  ;;  %v1113_v44 = vpack.c.bf16 %v683_v41, %v681_v36  ;;  %v687_v45 = vadd.f32 %v686_v16, %v1842_v6  ;;  %v1159_v46 = vpop.f32.mrb[4].mxu1 }
 0x28a   : > { %v768_v47 = vadd.f32 %v1159_v46, %v504_v10  ;;  %v759_v48 = vpop.f32.mrb[5].mxu1 }
 0x28b   : > { %858 = vst [vmem:[%s1849_s15 + $0x18] sm:$0xff] %v1113_v44  ;;  %v1115_v23 = vpack.c.bf16 %v687_v45, %v685_v43  ;;  %v760_v17 = vadd.f32 %v759_v48, %v504_v10  ;;  %v1160_v49 = vpop.f32.mrb[6].mxu1 }
 0x28c   : > { %v1122_v50 = vpack.c.bf16 %v768_v47, %v768_v47  ;;  %v771_v51 = vadd.f32 %v1160_v49, %v504_v10  ;;  %v762_v52 = vpop.f32.mrb[7].mxu1 }
 0x28d   : > { %860 = vst [vmem:[%s1849_s15 + $0x24] sm:$0xff] %v1115_v23  ;;  %v1118_v53 = vpack.c.bf16 %v760_v17, %v760_v17  ;;  %v763_v54 = vadd.f32 %v762_v52, %v504_v10  ;;  %v690_v24 = vpop.f32.mrb[8].mxu0 }
 0x28e   : > { %867 = vst [vmem:[%s1849_s15 + $0x50] sm:$0xf] %v1122_v50  ;;  %v1124_v31 = vpack.c.bf16 %v771_v51, %v771_v51  ;;  %v691_v55 = vadd.f32 %v690_v24, %v1840_v4  ;;  %v692_v56 = vpop.f32.mrb[9].mxu0 }
 0x28f   : > { %863 = vst [vmem:[%s1849_s15 + $0x38] sm:$0xf] %v1118_v53  ;;  %v1120_v57 = vpack.c.bf16 %v763_v54, %v763_v54  ;;  %v693_v58 = vadd.f32 %v692_v56, %v1842_v6  ;;  %v694_v59 = vpop.f32.mrb[10].mxu0 }
 0x290   : > { %869 = vst [vmem:[%s1849_s15 + $0x5c] sm:$0xf] %v1124_v31  ;;  %v695_v60 = vadd.f32 %v694_v59, %v1840_v4  ;;  %v696_v61 = vpop.f32.mrb[11].mxu0 }
 0x291   : > { %865 = vst [vmem:[%s1849_s15 + $0x44] sm:$0xf] %v1120_v57  ;;  %v1117_v32 = vpack.c.bf16 %v693_v58, %v691_v55  ;;  %v697_v62 = vadd.f32 %v696_v61, %v1842_v6 }
 0x293   : > { %862 = vst [vmem:[%s1849_s15 + $0x30] sm:$0xff] %v1117_v32  ;;  %v1119_v39 = vpack.c.bf16 %v697_v62, %v695_v60 }
 0x295   : > { %864 = vst [vmem:[%s1849_s15 + $0x3c] sm:$0xff] %v1119_v39  ;;  %v700_v0 = vpop.f32.mrb[12].mxu0 }
 0x296   : > { %v701_v40 = vadd.f32 %v700_v0, %v1840_v4  ;;  %v702_v63 = vpop.f32.mrb[13].mxu0 }
 0x297   : > { %v703_v1 = vadd.f32 %v702_v63, %v1842_v6  ;;  %v704_v2 = vpop.f32.mrb[14].mxu0 }
 0x298   : > { %v705_v3 = vadd.f32 %v704_v2, %v1840_v4  ;;  %v706_v5 = vpop.f32.mrb[15].mxu0 }
 0x299   : > { %v1121_v7 = vpack.c.bf16 %v703_v1, %v701_v40  ;;  %v707_v8 = vadd.f32 %v706_v5, %v1842_v6 }
 0x29b   : > { %866 = vst [vmem:[%s1849_s15 + $0x48] sm:$0xff] %v1121_v7  ;;  %v1123_v9 = vpack.c.bf16 %v707_v8, %v705_v3 }
 0x29d   : > { %868 = vst [vmem:[%s1849_s15 + $0x54] sm:$0xff] %v1123_v9 }
 0x29e   : > { %1414 = shalt.err (!%p1411_p4)
}
 0x29f   : > { %s1415_s6 = scalar_lea.hbm %s1883_s7, 1536  ;;  %s1419_s12 = scalar_lea.hbm %s1981_s4, 6144 }
 0x2a0   : > { %p1416_p5 = scmp.ne.s32.totalorder %s1883_s7, %s1415_s6  ;;  %p1420_p6 = scmp.lt.u32.totalorder %s1883_s7, %s1981_s4 }
 0x2a1   : > { %p1421_p8 = scmp.lt.u32.totalorder %s1419_s12, %s1415_s6  ;;  %p1423_p12 = scmp.lt.u32.totalorder %s1415_s6, %s1883_s7 }
 0x2a2   : > { %p1417_p9 = pnand %p1416_p5, %p1662_p11 }
 0x2a3   : > { %p1422_p10 = por %p1421_p8, %p1420_p6 }
 0x2a4   : > { %p1418_p0 = pneg %p1417_p9 }
 0x2a5   : > { %p1424_p13 = por %p1423_p12, %p1422_p10 }
 0x2a7   : > { %p1425_p3 = pnand %p1424_p13, %p1418_p0 }
 0x2a9   : > { %1428 = shalt.err (!%p1425_p3)
}
 0x2aa   : > { %s1520_s16 = smov 192   ;;  %s1521_s17 = smov 12  }
 0x2ab   : > { %1171 = dma.vmem_to_hbm [thread:$0]  (%p1662_p11), %s1885_s25, 1536, %s1883_s7, %s876_s9, %s1520_s16, %s1520_s16, %s1521_s17  }
 0x2ac PF: > { %s1982_s20 = sld [smem:[#allocation14_spill]]  ;;  %s1983_s24 = sld [smem:[#allocation16_spill]] }
 0x2ad   : > { %p1192_p7 = scmp.ge.s32.totalorder %s1507_s28, 2 }
 0x2b2   : > { %s925_s26 = sand.u32 1, %s1982_s20   ;;  %p1984_p1 = scmp.ne.s32.totalorder %s1983_s24, 0 }
 0x2b3   : > { %s926_s19 = scalar_lea.sflag [#allocation4], %s925_s26 }
 0x2b4   : > { %p1183_p2 = pnand %p1192_p7, %p1984_p1 }
 0x2b6   : > { %1470 = dma.done.wait (!%p1183_p2), %s926_s19, 1024  }
 0x2b7   : > { %1472 = vsyncadd (!%p1183_p2), %s926_s19, 4294966272  ;;  %s935_s11 = scalar_lea.sflag [#allocation9], %s925_s26 }
 0x2b8   : > { %1474 = dma.done.wait (!%p1183_p2), %s935_s11, 1536  }
 0x2b9   : > { %1476 = vsyncadd (!%p1183_p2), %s935_s11, 4294965760  ;;  %s27_s28 = sadd.s32 1, %s1507_s28   ;;  %s1985_s24 = sld [smem:[#allocation15_spill]] }
 0x2ba   : > { %p24_p4 = scmp.ge.s32.totalorder %s27_s28, 6   ;;  %s1986_s26 = sld [smem:[#allocation17_spill]] }
 0x2bb   : > { %s1987_s14 = sld [smem:[#allocation18_spill]]  ;;  %s1988_s21 = smov %s1483_s22 }
 0x2bc   : > { %s1989_s22 = smov %s1487_s23  ;;  %s1990_s23 = smov %s1679_s10 }
 0x2bd   : > { %s1991_s25 = smov %s1503_s27  ;;  %26 = sbr.rel (!%p24_p4) target bundleno = 14 (0xe), region = 106 }
 0x2c1   : > { %s1992_s27 = smov %s1987_s14 }
 0x2c4   :  { %940 = vsyncpa [#allocation3], 1 }
 0x2c5   :  { %942 = vsyncpa [#allocation3 + $0x1], 1 }
 0x2c6   :  { %943 = vsyncpa [#allocation6], 1 }
 0x2c7   :  { %944 = vsyncpa [#allocation4], 1 }
 0x2c8   :  { %946 = vsyncpa [#allocation4 + $0x1], 1 }
 0x2c9   :  { %947 = vsyncpa [#allocation9], 1 }
 0x2ca   :  { %949 = vsyncpa [#allocation9 + $0x1], 1 }

</bundles_post_ra>
